<compile_context>
chip_gen: v7x
topology: tpu7x:2x2x1
jax: 0.10.0
libtpu: 0.0.40
codegen_flags: <defaults>
</compile_context>

<pallas_src>
import functools

import jax
import jax.numpy as jnp
from jax.experimental import pallas as pl
from jax.experimental.pallas import tpu as pltpu

IN_DIM = 784


def encoder_kernel(x_ref, *refs):
    """Fused 5-layer MLP, everything resident in VMEM for the current tile.

    refs = (w0, b0, w1, b1, ..., w4, b4, out).  Dots run on the MXU in the
    weights' dtype (bf16) with f32 accumulation; bias add + tanh stay f32.
    """
    *wb, o_ref = refs
    h = x_ref[...]
    for i in range(0, len(wb), 2):
        w_ref, b_ref = wb[i], wb[i + 1]
        h = jnp.tanh(
            jnp.dot(h.astype(w_ref.dtype), w_ref[...],
                    preferred_element_type=jnp.float32)
            + b_ref[...])
    o_ref[...] = h.astype(o_ref.dtype)


def _pick_fold(batch, hidden):
    """Smallest row-fold factor that makes the hidden dim lane-dense (128)."""
    if hidden % 128 == 0:
        return 1
    for f in (2, 4, 8):
        if batch % f == 0 and (hidden * f) % 128 == 0:
            return f
    return 1


def _fold_params(params, fold, compute_dtype):
    """Turn (W, b) into (kron(I_fold, W), tile(b, fold)) in the compute dtype."""
    folded = []
    eye = None
    for (w, b) in params:
        if fold == 1:
            wf, bf = w, b
        else:
            if eye is None:
                eye = jnp.eye(fold, dtype=w.dtype)
            wf = jnp.kron(eye, w)          # block-diagonal (fold*in, fold*out)
            bf = jnp.tile(b, (1, fold))    # (1, fold*out)
        folded.append((wf.astype(compute_dtype), bf.astype(jnp.float32)))
    return folded


@functools.partial(jax.jit, static_argnames=("batch_tile", "compute_dtype"))
def encoder_forward(x, params, batch_tile=1024, compute_dtype=jnp.bfloat16):
    """x: (B, 784).  params: list of (W_t, b) with W_t = (in, out), b = (1, out)."""
    B, in_dim = x.shape
    hidden = params[0][0].shape[1]

    fold = _pick_fold(B, hidden)
    Bf = B // fold
    xf = x.reshape(Bf, fold * in_dim)            # free row-major view
    fparams = _fold_params(params, fold, compute_dtype)
    out_dim = fparams[-1][0].shape[1]            # fold * hidden

    # Large batch tile (MXU / pipeline efficiency), but keep >= 2 grid steps
    # when the batch allows it so both v7x TensorCores get work.
    tile = max(8, min(batch_tile // fold, Bf))
    if Bf >= 16:
        tile = min(tile, pl.cdiv(Bf, 2))
    if tile < Bf:
        tile = max(8, (tile // 8) * 8)           # sublane-aligned partial tile
    else:
        tile = Bf                                # full (possibly ragged) batch
    grid = (pl.cdiv(Bf, tile),)

    in_specs = [pl.BlockSpec((tile, fold * in_dim), lambda i: (i, 0))]
    flat = [xf]
    for (w, b) in fparams:
        # Constant index_map -> DMA'd once, VMEM-resident across the grid.
        in_specs.append(pl.BlockSpec(w.shape, lambda i: (0, 0)))
        in_specs.append(pl.BlockSpec(b.shape, lambda i: (0, 0)))
        flat += [w, b]

    out_f = pl.pallas_call(
        encoder_kernel,
        out_shape=jax.ShapeDtypeStruct((Bf, out_dim), jnp.float32),
        grid_spec=pltpu.PrefetchScalarGridSpec(
            num_scalar_prefetch=0,
            grid=grid,
            in_specs=in_specs,
            out_specs=pl.BlockSpec((tile, out_dim), lambda i: (i, 0)),
        ),
        compiler_params=pltpu.CompilerParams(
            dimension_semantics=("parallel",),
            vmem_limit_bytes=32 * 1024 * 1024,   # v5e scoped default is 16 MiB
        ),
    )(*flat)

    return out_f.reshape(B, hidden)              # free row-major view back


def init_params(key, hidden):
    """Deterministic init matching nn.Linear shapes: W (out,in), b (out,).
    Stored transposed as (in, out) / (1, out) for the kernel (y = x @ W + b)."""
    dims = [(IN_DIM, hidden)] + [(hidden, hidden)] * 4
    params = []
    for (fan_in, fan_out) in dims:
        key, kw, kb = jax.random.split(key, 3)
        bound = 1.0 / jnp.sqrt(fan_in)
        w = jax.random.uniform(kw, (fan_out, fan_in), jnp.float32, -bound, bound)
        b = jax.random.uniform(kb, (fan_out,), jnp.float32, -bound, bound)
        params.append((w.T, b.reshape(1, fan_out)))
    return params


def encoder_ref_f32(x, params):
    """Plain-JAX float32 reference (the PyTorch module's math)."""
    h = x
    for (w, b) in params:
        h = jnp.tanh(h @ w + b)
    return h


def encoder_ref_matched(x, params):
    """Reference with the kernel's dtype policy (bf16 MXU inputs, f32 accum)."""
    h = x
    for (w, b) in params:
        h = jnp.tanh(
            jnp.dot(h.astype(jnp.bfloat16), w.astype(jnp.bfloat16),
                    preferred_element_type=jnp.float32) + b)
    return h


if __name__ == "__main__":
    key = jax.random.PRNGKey(0)
    hidden = 32
    batch = 512

    k_x, k_p = jax.random.split(key)
    x = jax.random.normal(k_x, (batch, IN_DIM), jnp.float32)
    params = init_params(k_p, hidden)

    out = jax.block_until_ready(encoder_forward(x, params))
    assert out.shape == (batch, hidden), out.shape

    # Check against a reference using the same dtype policy (tight-ish).
    ref_m = encoder_ref_matched(x, params)
    assert jnp.allclose(out, ref_m, atol=5e-3, rtol=5e-3), \
        float(jnp.max(jnp.abs(out - ref_m)))
    # Check against the full-f32 (PyTorch-semantics) reference (bf16-loose).
    ref_f = encoder_ref_f32(x, params)
    assert jnp.allclose(out, ref_f, atol=5e-2, rtol=5e-2), \
        float(jnp.max(jnp.abs(out - ref_f)))

    print("KERNEL_OK")
</pallas_src>

<mosaic_0001>
module attributes {stable_mosaic.version = 11 : i64} {
  func.func @encoder_kernel(%arg0: i32, %arg1: memref<64x3136xf32, #tpu.memory_space<vmem>>, %arg2: memref<3136x128xbf16, #tpu.memory_space<vmem>>, %arg3: memref<1x128xf32, #tpu.memory_space<vmem>>, %arg4: memref<128x128xbf16, #tpu.memory_space<vmem>>, %arg5: memref<1x128xf32, #tpu.memory_space<vmem>>, %arg6: memref<128x128xbf16, #tpu.memory_space<vmem>>, %arg7: memref<1x128xf32, #tpu.memory_space<vmem>>, %arg8: memref<128x128xbf16, #tpu.memory_space<vmem>>, %arg9: memref<1x128xf32, #tpu.memory_space<vmem>>, %arg10: memref<128x128xbf16, #tpu.memory_space<vmem>>, %arg11: memref<1x128xf32, #tpu.memory_space<vmem>>, %arg12: memref<64x128xf32, #tpu.memory_space<vmem>>) attributes {dimension_semantics = [#tpu.dimension_semantics<parallel>], iteration_bounds = array<i64: 2>, scalar_prefetch = 0 : i64, scratch_operands = 0 : i64, tpu.core_type = #tpu.core_type<tc>, window_params = [{transform_indices = @transform_0, window_bounds = array<i64: 64, 3136>}, {pipeline_mode = #tpu.pipeline_mode<synchronous>, transform_indices = @transform_1, window_bounds = array<i64: 3136, 128>}, {pipeline_mode = #tpu.pipeline_mode<synchronous>, transform_indices = @transform_2, window_bounds = array<i64: 1, 128>}, {pipeline_mode = #tpu.pipeline_mode<synchronous>, transform_indices = @transform_3, window_bounds = array<i64: 128, 128>}, {pipeline_mode = #tpu.pipeline_mode<synchronous>, transform_indices = @transform_4, window_bounds = array<i64: 1, 128>}, {pipeline_mode = #tpu.pipeline_mode<synchronous>, transform_indices = @transform_5, window_bounds = array<i64: 128, 128>}, {pipeline_mode = #tpu.pipeline_mode<synchronous>, transform_indices = @transform_6, window_bounds = array<i64: 1, 128>}, {pipeline_mode = #tpu.pipeline_mode<synchronous>, transform_indices = @transform_7, window_bounds = array<i64: 128, 128>}, {pipeline_mode = #tpu.pipeline_mode<synchronous>, transform_indices = @transform_8, window_bounds = array<i64: 1, 128>}, {pipeline_mode = #tpu.pipeline_mode<synchronous>, transform_indices = @transform_9, window_bounds = array<i64: 128, 128>}, {pipeline_mode = #tpu.pipeline_mode<synchronous>, transform_indices = @transform_10, window_bounds = array<i64: 1, 128>}, {transform_indices = @transform_11, window_bounds = array<i64: 64, 128>}]} {
    %c0 = arith.constant 0 : index
    %c0_0 = arith.constant 0 : index
    %0 = vector.load %arg1[%c0, %c0_0] : memref<64x3136xf32, #tpu.memory_space<vmem>>, vector<64x3136xf32>
    %1 = arith.truncf %0 : vector<64x3136xf32> to vector<64x3136xbf16>
    %c0_1 = arith.constant 0 : index
    %c0_2 = arith.constant 0 : index
    %2 = vector.load %arg2[%c0_1, %c0_2] : memref<3136x128xbf16, #tpu.memory_space<vmem>>, vector<3136x128xbf16>
    %cst = arith.constant dense<0.000000e+00> : vector<64x128xf32>
    %3 = tpu.matmul %1, %2, %cst {dimension_numbers = #tpu.dot_dimension_numbers<[1], [0], [0], [1], [0, 0, 1, 1], [], []>} : vector<64x3136xbf16>, vector<3136x128xbf16>, vector<64x128xf32> -> vector<64x128xf32>
    %c0_3 = arith.constant 0 : index
    %c0_4 = arith.constant 0 : index
    %4 = vector.load %arg3[%c0_3, %c0_4] : memref<1x128xf32, #tpu.memory_space<vmem>>, vector<1x128xf32>
    %5 = vector.broadcast %4 : vector<1x128xf32> to vector<64x128xf32>
    %6 = arith.addf %3, %5 : vector<64x128xf32>
    %7 = math.tanh %6 : vector<64x128xf32>
    %8 = arith.truncf %7 : vector<64x128xf32> to vector<64x128xbf16>
    %c0_5 = arith.constant 0 : index
    %c0_6 = arith.constant 0 : index
    %9 = vector.load %arg4[%c0_5, %c0_6] : memref<128x128xbf16, #tpu.memory_space<vmem>>, vector<128x128xbf16>
    %cst_7 = arith.constant dense<0.000000e+00> : vector<64x128xf32>
    %10 = tpu.matmul %8, %9, %cst_7 {dimension_numbers = #tpu.dot_dimension_numbers<[1], [0], [0], [1], [0, 0, 1, 1], [], []>} : vector<64x128xbf16>, vector<128x128xbf16>, vector<64x128xf32> -> vector<64x128xf32>
    %c0_8 = arith.constant 0 : index
    %c0_9 = arith.constant 0 : index
    %11 = vector.load %arg5[%c0_8, %c0_9] : memref<1x128xf32, #tpu.memory_space<vmem>>, vector<1x128xf32>
    %12 = vector.broadcast %11 : vector<1x128xf32> to vector<64x128xf32>
    %13 = arith.addf %10, %12 : vector<64x128xf32>
    %14 = math.tanh %13 : vector<64x128xf32>
    %15 = arith.truncf %14 : vector<64x128xf32> to vector<64x128xbf16>
    %c0_10 = arith.constant 0 : index
    %c0_11 = arith.constant 0 : index
    %16 = vector.load %arg6[%c0_10, %c0_11] : memref<128x128xbf16, #tpu.memory_space<vmem>>, vector<128x128xbf16>
    %cst_12 = arith.constant dense<0.000000e+00> : vector<64x128xf32>
    %17 = tpu.matmul %15, %16, %cst_12 {dimension_numbers = #tpu.dot_dimension_numbers<[1], [0], [0], [1], [0, 0, 1, 1], [], []>} : vector<64x128xbf16>, vector<128x128xbf16>, vector<64x128xf32> -> vector<64x128xf32>
    %c0_13 = arith.constant 0 : index
    %c0_14 = arith.constant 0 : index
    %18 = vector.load %arg7[%c0_13, %c0_14] : memref<1x128xf32, #tpu.memory_space<vmem>>, vector<1x128xf32>
    %19 = vector.broadcast %18 : vector<1x128xf32> to vector<64x128xf32>
    %20 = arith.addf %17, %19 : vector<64x128xf32>
    %21 = math.tanh %20 : vector<64x128xf32>
    %22 = arith.truncf %21 : vector<64x128xf32> to vector<64x128xbf16>
    %c0_15 = arith.constant 0 : index
    %c0_16 = arith.constant 0 : index
    %23 = vector.load %arg8[%c0_15, %c0_16] : memref<128x128xbf16, #tpu.memory_space<vmem>>, vector<128x128xbf16>
    %cst_17 = arith.constant dense<0.000000e+00> : vector<64x128xf32>
    %24 = tpu.matmul %22, %23, %cst_17 {dimension_numbers = #tpu.dot_dimension_numbers<[1], [0], [0], [1], [0, 0, 1, 1], [], []>} : vector<64x128xbf16>, vector<128x128xbf16>, vector<64x128xf32> -> vector<64x128xf32>
    %c0_18 = arith.constant 0 : index
    %c0_19 = arith.constant 0 : index
    %25 = vector.load %arg9[%c0_18, %c0_19] : memref<1x128xf32, #tpu.memory_space<vmem>>, vector<1x128xf32>
    %26 = vector.broadcast %25 : vector<1x128xf32> to vector<64x128xf32>
    %27 = arith.addf %24, %26 : vector<64x128xf32>
    %28 = math.tanh %27 : vector<64x128xf32>
    %29 = arith.truncf %28 : vector<64x128xf32> to vector<64x128xbf16>
    %c0_20 = arith.constant 0 : index
    %c0_21 = arith.constant 0 : index
    %30 = vector.load %arg10[%c0_20, %c0_21] : memref<128x128xbf16, #tpu.memory_space<vmem>>, vector<128x128xbf16>
    %cst_22 = arith.constant dense<0.000000e+00> : vector<64x128xf32>
    %31 = tpu.matmul %29, %30, %cst_22 {dimension_numbers = #tpu.dot_dimension_numbers<[1], [0], [0], [1], [0, 0, 1, 1], [], []>} : vector<64x128xbf16>, vector<128x128xbf16>, vector<64x128xf32> -> vector<64x128xf32>
    %c0_23 = arith.constant 0 : index
    %c0_24 = arith.constant 0 : index
    %32 = vector.load %arg11[%c0_23, %c0_24] : memref<1x128xf32, #tpu.memory_space<vmem>>, vector<1x128xf32>
    %33 = vector.broadcast %32 : vector<1x128xf32> to vector<64x128xf32>
    %34 = arith.addf %31, %33 : vector<64x128xf32>
    %35 = math.tanh %34 : vector<64x128xf32>
    %c0_25 = arith.constant 0 : index
    %c0_26 = arith.constant 0 : index
    %36 = vector.load %arg12[%c0_25, %c0_26] : memref<64x128xf32, #tpu.memory_space<vmem>>, vector<64x128xf32>
    tpu.vector_store %arg12[%c0_25, %c0_26], %35 {strides = array<i32>} : memref<64x128xf32, #tpu.memory_space<vmem>>, vector<64x128xf32>,
    return
  }
  func.func @transform_0(%arg0: i32) -> (i32, i32) {
    %c0_i32 = arith.constant 0 : i32
    %c0_i32_0 = arith.constant 0 : i32
    return %arg0, %c0_i32 : i32, i32
  }
  func.func @transform_1(%arg0: i32) -> (i32, i32) {
    %c0_i32 = arith.constant 0 : i32
    %c0_i32_0 = arith.constant 0 : i32
    %c0_i32_1 = arith.constant 0 : i32
    return %c0_i32, %c0_i32_0 : i32, i32
  }
  func.func @transform_2(%arg0: i32) -> (i32, i32) {
    %c0_i32 = arith.constant 0 : i32
    %c0_i32_0 = arith.constant 0 : i32
    %c0_i32_1 = arith.constant 0 : i32
    return %c0_i32, %c0_i32_0 : i32, i32
  }
  func.func @transform_3(%arg0: i32) -> (i32, i32) {
    %c0_i32 = arith.constant 0 : i32
    %c0_i32_0 = arith.constant 0 : i32
    %c0_i32_1 = arith.constant 0 : i32
    return %c0_i32, %c0_i32_0 : i32, i32
  }
  func.func @transform_4(%arg0: i32) -> (i32, i32) {
    %c0_i32 = arith.constant 0 : i32
    %c0_i32_0 = arith.constant 0 : i32
    %c0_i32_1 = arith.constant 0 : i32
    return %c0_i32, %c0_i32_0 : i32, i32
  }
  func.func @transform_5(%arg0: i32) -> (i32, i32) {
    %c0_i32 = arith.constant 0 : i32
    %c0_i32_0 = arith.constant 0 : i32
    %c0_i32_1 = arith.constant 0 : i32
    return %c0_i32, %c0_i32_0 : i32, i32
  }
  func.func @transform_6(%arg0: i32) -> (i32, i32) {
    %c0_i32 = arith.constant 0 : i32
    %c0_i32_0 = arith.constant 0 : i32
    %c0_i32_1 = arith.constant 0 : i32
    return %c0_i32, %c0_i32_0 : i32, i32
  }
  func.func @transform_7(%arg0: i32) -> (i32, i32) {
    %c0_i32 = arith.constant 0 : i32
    %c0_i32_0 = arith.constant 0 : i32
    %c0_i32_1 = arith.constant 0 : i32
    return %c0_i32, %c0_i32_0 : i32, i32
  }
  func.func @transform_8(%arg0: i32) -> (i32, i32) {
    %c0_i32 = arith.constant 0 : i32
    %c0_i32_0 = arith.constant 0 : i32
    %c0_i32_1 = arith.constant 0 : i32
    return %c0_i32, %c0_i32_0 : i32, i32
  }
  func.func @transform_9(%arg0: i32) -> (i32, i32) {
    %c0_i32 = arith.constant 0 : i32
    %c0_i32_0 = arith.constant 0 : i32
    %c0_i32_1 = arith.constant 0 : i32
    return %c0_i32, %c0_i32_0 : i32, i32
  }
  func.func @transform_10(%arg0: i32) -> (i32, i32) {
    %c0_i32 = arith.constant 0 : i32
    %c0_i32_0 = arith.constant 0 : i32
    %c0_i32_1 = arith.constant 0 : i32
    return %c0_i32, %c0_i32_0 : i32, i32
  }
  func.func @transform_11(%arg0: i32) -> (i32, i32) {
    %c0_i32 = arith.constant 0 : i32
    %c0_i32_0 = arith.constant 0 : i32
    return %arg0, %c0_i32 : i32, i32
  }
}

</mosaic_0001>

<bundles_post_ra>
// kernel: encoder_forward.1
= control target key start
LH: loop header
LB: loop body
LE: loop exit
PB: predicated region body
PF: predicated region fallthrough
CT: control target
= control target key end

     0   :  { %s5088_s17 = smov 0   ;;  %s6089_s0 = inlined_call_operand.vmem [shape: f32[128,3136], index: 0, kind: input, shape index: {}]   ;;  %s6090_s1 = inlined_call_operand.vmem [shape: bf16[3136,128], index: 1, kind: input, shape index: {}]   ;;  %s6091_s2 = inlined_call_operand.vmem [shape: f32[1,128], index: 2, kind: input, shape index: {}]   ;;  %s6092_s3 = inlined_call_operand.vmem [shape: bf16[128,128], index: 3, kind: input, shape index: {}]   ;;  %s6093_s4 = inlined_call_operand.vmem [shape: f32[1,128], index: 4, kind: input, shape index: {}]   ;;  %s6094_s5 = inlined_call_operand.vmem [shape: bf16[128,128], index: 5, kind: input, shape index: {}]   ;;  %s6095_s6 = inlined_call_operand.vmem [shape: f32[1,128], index: 6, kind: input, shape index: {}]   ;;  %s6096_s7 = inlined_call_operand.vmem [shape: bf16[128,128], index: 7, kind: input, shape index: {}]   ;;  %s6097_s8 = inlined_call_operand.vmem [shape: f32[1,128], index: 8, kind: input, shape index: {}]   ;;  %s6098_s9 = inlined_call_operand.vmem [shape: bf16[128,128], index: 9, kind: input, shape index: {}]   ;;  %s6099_s10 = inlined_call_operand.vmem [shape: f32[1,128], index: 10, kind: input, shape index: {}]   ;;  %s6100_s11 = inlined_call_operand.vmem [shape: f32[128,128], index: 11, kind: output, shape index: {}]  }
   0x1 LB: > { %s3791_s18 = sadd.s32 4294967295, %s5026_s17   ;;  %p3795_p0 = scmp.ge.s32.totalorder %s5026_s17, 1  ;;  %s5026_s17 = sphi %s5088_s17, %s21_s17  }
   0x2   : > { %p339_p1 = scmp.lt.s32.totalorder %s5026_s17, 3 }
   0x4   : > { %p340_p2 = pnand %p3795_p0, %p339_p1 }
   0x5   : > { %v4712_v0 = vld [vmem:[%s6090_s1 + $0x40] sm:$0xff] (!%p340_p2)   ;;  %v4716_v4 = vld [vmem:[%s6090_s1 + $0x48] sm:$0xff] (!%p340_p2)   ;;  %v4720_v8 = vld [vmem:[%s6090_s1 + $0x50] sm:$0xff] (!%p340_p2)   ;;  %s3796_s30 = sshll.u32 (!%p340_p2), %s3791_s18, 3  ;;  %vm2269_vm0 = vcmask (!%p340_p2), 523264  }
   0x6   : > { %343 = sbr.rel (%p340_p2) target bundleno = 1419 (0x58b), region = 64  ;;  %v4713_v1 = vld [vmem:[%s6090_s1] sm:$0xff] (!%p340_p2)   ;;  %4039 = vmatprep.subr.bf16.mxu0 (!%p340_p2), %v4712_v0  ;;  %v4717_v5 = vld [vmem:[%s6090_s1 + $0x8] sm:$0xff] (!%p340_p2)   ;;  %v4721_v9 = vld [vmem:[%s6090_s1 + $0x10] sm:$0xff] (!%p340_p2)   ;;  %p381_p3 = scmp.lt.s32.totalorder (!%p340_p2), %s3796_s30, 15 }
   0x7   : > { %v4714_v2 = vld [vmem:[%s6090_s1 + $0xc0] sm:$0xff] (!%p340_p2)   ;;  %4040 = vmatpush3.bf16.msra.mxu0 (!%p340_p2), %v4713_v1  ;;  %v4718_v6 = vld [vmem:[%s6090_s1 + $0xc8] sm:$0xff] (!%p340_p2)   ;;  %v4722_v10 = vld [vmem:[%s6090_s1 + $0xd0] sm:$0xff] (!%p340_p2)  }
   0x8   : > { %v4715_v3 = vld [vmem:[%s6090_s1 + $0x80] sm:$0xff] (!%p340_p2)   ;;  %4079 = vmatprep.subr.bf16.mxu1 (!%p340_p2), %v4714_v2  ;;  %4041 = vmatprep.subr.bf16.mxu0 (!%p340_p2), %v4716_v4  ;;  %v4719_v7 = vld [vmem:[%s6090_s1 + $0x88] sm:$0xff] (!%p340_p2)   ;;  %v4723_v11 = vld [vmem:[%s6090_s1 + $0x90] sm:$0xff] (!%p340_p2)  }
   0x9   : > { %4080 = vmatpush3.bf16.msra.mxu1 (!%p340_p2), %v4715_v3  ;;  %v4724_v12 = vld [vmem:[%s6090_s1 + $0x58] sm:$0xff] (!%p340_p2)   ;;  %v4728_v16 = vld [vmem:[%s6090_s1 + $0x60] sm:$0xff] (!%p340_p2)   ;;  %v4732_v20 = vld [vmem:[%s6090_s1 + $0x68] sm:$0xff] (!%p340_p2)  }
   0xa   : > { %4081 = vmatprep.subr.bf16.mxu1 (!%p340_p2), %v4718_v6  ;;  %v4725_v13 = vld [vmem:[%s6090_s1 + $0x18] sm:$0xff] (!%p340_p2)   ;;  %v4729_v17 = vld [vmem:[%s6090_s1 + $0x20] sm:$0xff] (!%p340_p2)   ;;  %v4733_v21 = vld [vmem:[%s6090_s1 + $0x28] sm:$0xff] (!%p340_p2)  }
   0xb   : > { %4042 = vmatpush3.bf16.msra.mxu0 (!%p340_p2), %v4717_v5  ;;  %v4726_v14 = vld [vmem:[%s6090_s1 + $0xd8] sm:$0xff] (!%p340_p2)   ;;  %v4730_v18 = vld [vmem:[%s6090_s1 + $0xe0] sm:$0xff] (!%p340_p2)   ;;  %v4734_v22 = vld [vmem:[%s6090_s1 + $0xe8] sm:$0xff] (!%p340_p2)  }
   0xc   : > { %4043 = vmatprep.subr.bf16.mxu0 (!%p340_p2), %v4720_v8  ;;  %v4727_v15 = vld [vmem:[%s6090_s1 + $0x98] sm:$0xff] (!%p340_p2)   ;;  %v4731_v19 = vld [vmem:[%s6090_s1 + $0xa0] sm:$0xff] (!%p340_p2)   ;;  %v4735_v23 = vld [vmem:[%s6090_s1 + $0xa8] sm:$0xff] (!%p340_p2)  }
   0xd   : > { %4082 = vmatpush3.bf16.msra.mxu1 %v4719_v7  ;;  %s6102_s30 = smov (!%p381_p3, %s3796_s30), 15  ;;  %v4736_v24 = vld [vmem:[%s6090_s1 + $0x70] sm:$0xff]   ;;  %v4740_v28 = vld [vmem:[%s6090_s1 + $0x78] sm:$0xff]   ;;  %v4744_v38 = vld [vmem:[%s6090_s1 + $0x140] sm:$0xff]  }
   0xe   : > { %4083 = vmatprep.subr.bf16.mxu1 %v4722_v10  ;;  %s4703_s19 = smul.u32 200, %s6102_s30  ;;  %v4737_v25 = vld [vmem:[%s6090_s1 + $0x30] sm:$0xff]   ;;  %v4741_v29 = vld [vmem:[%s6090_s1 + $0x38] sm:$0xff]   ;;  %v4745_v42 = vld [vmem:[%s6090_s1 + $0x100] sm:$0xff]   ;;  %s3799_s15 = sshll.u32 %s6102_s30, 3 }
   0xf   : > { %4044 = vmatpush3.bf16.msra.mxu0 %v4721_v9  ;;  %v4738_v26 = vld [vmem:[%s6090_s1 + $0xf0] sm:$0xff]   ;;  %v4742_v30 = vld [vmem:[%s6090_s1 + $0xf8] sm:$0xff]   ;;  %v4746_v46 = vld [vmem:[%s6090_s1 + $0x1c0] sm:$0xff]   ;;  %s391_s20 = scalar_lea.vmem %s6100_s11, %s3799_s15 }
  0x10   : > { %4045 = vmatprep.subr.bf16.mxu0 %v4724_v12  ;;  %v4739_v27 = vld [vmem:[%s6090_s1 + $0xb0] sm:$0xff]   ;;  %s5191_s29 = scalar_lea.vmem %s6089_s0, %s4703_s19  ;;  %v4743_v34 = vld [vmem:[%s6090_s1 + $0xb8] sm:$0xff]   ;;  %v4747_v47 = vld [vmem:[%s6090_s1 + $0x180] sm:$0xff]  }
  0x11   : > { %4084 = vmatpush3.bf16.msra.mxu1 %v4723_v11  ;;  %v395_v31 = vld [vmem:[%s5191_s29 + $0x8] sm:$0xff]  ;;  %v420_v32 = vld [vmem:[%s5191_s29 + $0xd0] sm:$0xff]  ;;  %v394_v35 = vld [vmem:[%s5191_s29] sm:$0xff] }
  0x12   : > { %4085 = vmatprep.subr.bf16.mxu1 %v4726_v14  ;;  %v595_v33 = vpack.c.bf16 %v420_v32, %v395_v31  ;;  %v419_v36 = vld [vmem:[%s5191_s29 + $0xc8] sm:$0xff]  ;;  %v397_v39 = vld [vmem:[%s5191_s29 + $0x18] sm:$0xff]  ;;  %v422_v40 = vld [vmem:[%s5191_s29 + $0xe0] sm:$0xff] }
  0x13   : > { %4046 = vmatpush3.bf16.msra.mxu0 %v4725_v13  ;;  %v594_v37 = vpack.c.bf16 %v419_v36, %v394_v35  ;;  %v597_v41 = vpack.c.bf16 %v422_v40, %v397_v39  ;;  %v396_v43 = vld [vmem:[%s5191_s29 + $0x10] sm:$0xff]  ;;  %v421_v44 = vld [vmem:[%s5191_s29 + $0xd8] sm:$0xff]  ;;  %v4748_v48 = vld [vmem:[%s6090_s1 + $0x148] sm:$0xff]  }
  0x14   : > { %4047 = vmatprep.subr.bf16.mxu0 %v4728_v16  ;;  %2314 = vmatprep.mubr.bf16.mxu0 %v595_v33  ;;  %v596_v45 = vpack.c.bf16 %v421_v44, %v396_v43  ;;  %v4749_v49 = vld [vmem:[%s6090_s1 + $0x108] sm:$0xff]   ;;  %v445_v51 = vld [vmem:[%s5191_s29 + $0x198] sm:$0xff]  ;;  %v470_v52 = vld [vmem:[%s5191_s29 + $0x260] sm:$0xff] }
  0x15   : > { %4086 = vmatpush3.bf16.msra.mxu1 %v4727_v15  ;;  %2379 = vmatprep.mubr.bf16.mxu1 %v597_v41  ;;  %v4750_v50 = vld [vmem:[%s6090_s1 + $0x1c8] sm:$0xff]   ;;  %v620_v53 = vpack.c.bf16 %v470_v52, %v445_v51  ;;  %v444_v55 = vld [vmem:[%s5191_s29 + $0x190] sm:$0xff]  ;;  %v469_v56 = vld [vmem:[%s5191_s29 + $0x258] sm:$0xff] }
  0x16   : > { %4087 = vmatprep.subr.bf16.mxu1 %v4730_v18  ;;  %v4751_v54 = vld [vmem:[%s6090_s1 + $0x188] sm:$0xff]   ;;  %v619_v57 = vpack.c.bf16 %v469_v56, %v444_v55  ;;  %v4752_v58 = vld [vmem:[%s6090_s1 + $0x150] sm:$0xff]   ;;  %v446_v63 = vld [vmem:[%s5191_s29 + $0x1a0] sm:$0xff] }
  0x17   : > { %4048 = vmatpush3.bf16.msra.mxu0 %v4729_v17  ;;  %v447_v59 = vld [vmem:[%s5191_s29 + $0x1a8] sm:$0xff]  ;;  %v472_v60 = vld [vmem:[%s5191_s29 + $0x270] sm:$0xff]  ;;  %v4756_v4 = vld [vmem:[%s6090_s1 + $0x158] sm:$0xff]  }
  0x18   : > { %4049 = vmatprep.subr.bf16.mxu0 %v4732_v20  ;;  %v622_v61 = vpack.c.bf16 %v472_v60, %v447_v59  ;;  %v4753_v62 = vld [vmem:[%s6090_s1 + $0x110] sm:$0xff]   ;;  %v471_v0 = vld [vmem:[%s5191_s29 + $0x268] sm:$0xff]  ;;  %v4757_v5 = vld [vmem:[%s6090_s1 + $0x118] sm:$0xff]  }
  0x19   : > { %4088 = vmatpush3.bf16.msra.mxu1 %v4731_v19  ;;  %v621_v1 = vpack.c.bf16 %v471_v0, %v446_v63  ;;  %v4754_v2 = vld [vmem:[%s6090_s1 + $0x1d0] sm:$0xff]   ;;  %v4758_v6 = vld [vmem:[%s6090_s1 + $0x1d8] sm:$0xff]   ;;  %v495_v7 = vld [vmem:[%s5191_s29 + $0x328] sm:$0xff] }
  0x1a   : > { %4089 = vmatprep.subr.bf16.mxu1 %v4734_v22  ;;  %v4755_v3 = vld [vmem:[%s6090_s1 + $0x190] sm:$0xff]   ;;  %v4759_v10 = vld [vmem:[%s6090_s1 + $0x198] sm:$0xff]   ;;  %v494_v11 = vld [vmem:[%s5191_s29 + $0x320] sm:$0xff] }
  0x1b   : > { %4050 = vmatpush3.bf16.msra.mxu0 %v4733_v21  ;;  %v520_v8 = vld [vmem:[%s5191_s29 + $0x3f0] sm:$0xff]  ;;  %v519_v12 = vld [vmem:[%s5191_s29 + $0x3e8] sm:$0xff]  ;;  %v4760_v14 = vld [vmem:[%s6090_s1 + $0x160] sm:$0xff]  }
  0x1c   : > { %4051 = vmatprep.subr.bf16.mxu0 %v4736_v24  ;;  %v645_v9 = vpack.c.bf16 %v520_v8, %v495_v7  ;;  %v644_v13 = vpack.c.bf16 %v519_v12, %v494_v11  ;;  %v497_v15 = vld [vmem:[%s5191_s29 + $0x338] sm:$0xff]  ;;  %v522_v16 = vld [vmem:[%s5191_s29 + $0x400] sm:$0xff]  ;;  %v496_v19 = vld [vmem:[%s5191_s29 + $0x330] sm:$0xff] }
  0x1d   : > { %4090 = vmatpush3.bf16.msra.mxu1 %v4735_v23  ;;  %v647_v17 = vpack.c.bf16 %v522_v16, %v497_v15  ;;  %v4761_v18 = vld [vmem:[%s6090_s1 + $0x120] sm:$0xff]   ;;  %v521_v20 = vld [vmem:[%s5191_s29 + $0x3f8] sm:$0xff]  ;;  %v4764_v24 = vld [vmem:[%s6090_s1 + $0x168] sm:$0xff]  }
  0x1e   : > { %4091 = vmatprep.subr.bf16.mxu1 %v4738_v26  ;;  %v646_v21 = vpack.c.bf16 %v521_v20, %v496_v19  ;;  %v4762_v22 = vld [vmem:[%s6090_s1 + $0x1e0] sm:$0xff]   ;;  %v4766_v26 = vld [vmem:[%s6090_s1 + $0x1e8] sm:$0xff]   ;;  %v544_v31 = vld [vmem:[%s5191_s29 + $0x4b0] sm:$0xff] }
  0x1f   : > { %4052 = vmatpush3.bf16.msra.mxu0 %v4737_v25  ;;  %v4763_v23 = vld [vmem:[%s6090_s1 + $0x1a0] sm:$0xff]   ;;  %v4765_v25 = vld [vmem:[%s6090_s1 + $0x128] sm:$0xff]   ;;  %v569_v32 = vld [vmem:[%s5191_s29 + $0x578] sm:$0xff] }
  0x20   : > { %4053 = vmatprep.subr.bf16.mxu0 %v4740_v28  ;;  %v570_v28 = vld [vmem:[%s5191_s29 + $0x580] sm:$0xff]  ;;  %v669_v33 = vpack.c.bf16 %v569_v32, %v544_v31  ;;  %v547_v35 = vld [vmem:[%s5191_s29 + $0x4c8] sm:$0xff]  ;;  %v572_v36 = vld [vmem:[%s5191_s29 + $0x590] sm:$0xff] }
  0x21   : > { %4092 = vmatpush3.bf16.msra.mxu1 %v4739_v27  ;;  %v545_v27 = vld [vmem:[%s5191_s29 + $0x4b8] sm:$0xff]  ;;  %v546_v39 = vld [vmem:[%s5191_s29 + $0x4c0] sm:$0xff]  ;;  %v571_v40 = vld [vmem:[%s5191_s29 + $0x588] sm:$0xff] }
  0x22   : > { %4093 = vmatprep.subr.bf16.mxu1 %v4742_v30  ;;  %v4767_v30 = vld [vmem:[%s6090_s1 + $0x1a8] sm:$0xff]   ;;  %v671_v41 = vpack.c.bf16 %v571_v40, %v546_v39  ;;  %v4771_v43 = vld [vmem:[%s6090_s1 + $0x1b0] sm:$0xff]   ;;  %v4772_v44 = vld [vmem:[%s6090_s1 + $0x178] sm:$0xff]  }
  0x23   : > { %4054 = vmatpush3.bf16.msra.mxu0 %v4741_v29  ;;  %v670_v29 = vpack.c.bf16 %v570_v28, %v545_v27  ;;  %v398_v51 = vld [vmem:[%s5191_s29 + $0x20] sm:$0xff]  ;;  %v423_v52 = vld [vmem:[%s5191_s29 + $0xe8] sm:$0xff]  ;;  %v401_v55 = vld [vmem:[%s5191_s29 + $0x38] sm:$0xff] }
  0x24   : > { %4119 = vmatprep.subr.bf16.mxu0 %v4744_v38  ;;  %v4769_v38 = vld [vmem:[%s6090_s1 + $0x130] sm:$0xff]   ;;  %v426_v56 = vld [vmem:[%s5191_s29 + $0x100] sm:$0xff]  ;;  %v425_v60 = vld [vmem:[%s5191_s29 + $0xf8] sm:$0xff] }
  0x25   : > { %4094 = vmatpush3.bf16.msra.mxu1 %v4743_v34  ;;  %v4768_v34 = vld [vmem:[%s6090_s1 + $0x170] sm:$0xff]   ;;  %v4779_v63 = vld [vmem:[%s6090_s1 + $0x280] sm:$0xff]   ;;  %v4780_v0 = vld [vmem:[%s6090_s1 + $0x248] sm:$0xff]  }
  0x26   : > { %2315 = vmatmul.mubr.bf16.vlgmr.msra.gmra.mrb[0].mxu0 %v594_v37  ;;  %4159 = vmatprep.subr.bf16.mxu1 %v4746_v46  ;;  %v672_v37 = vpack.c.bf16 %v572_v36, %v547_v35  ;;  %v4774_v46 = vld [vmem:[%s6090_s1 + $0x1f8] sm:$0xff]   ;;  %v400_v59 = vld [vmem:[%s5191_s29 + $0x30] sm:$0xff]  ;;  %v451_v11 = vld [vmem:[%s5191_s29 + $0x1c8] sm:$0xff] }
  0x27   : > { %4120 = vmatpush3.bf16.msra.mxu0 %v4745_v42  ;;  %2322 = vmatprep.mubr.bf16.mxu0 %v620_v53  ;;  %v4770_v42 = vld [vmem:[%s6090_s1 + $0x1f0] sm:$0xff]   ;;  %v598_v53 = vpack.c.bf16 %v423_v52, %v398_v51  ;;  %v473_v8 = vld [vmem:[%s5191_s29 + $0x278] sm:$0xff]  ;;  %v450_v15 = vld [vmem:[%s5191_s29 + $0x1c0] sm:$0xff] }
  0x28   : > { %2380 = vmatmul.mubr.bf16.vlgmr.msra.gmra.mrb[0].mxu1 %v596_v45  ;;  %4121 = vmatprep.subr.bf16.mxu0 %v4748_v48  ;;  %v4773_v45 = vld [vmem:[%s6090_s1 + $0x138] sm:$0xff]   ;;  %v424_v48 = vld [vmem:[%s5191_s29 + $0xf0] sm:$0xff]  ;;  %v475_v16 = vld [vmem:[%s5191_s29 + $0x288] sm:$0xff] }
  0x29   : > { %4160 = vmatpush3.bf16.msra.mxu1 %v4747_v47  ;;  %2387 = vmatprep.mubr.bf16.mxu1 %v622_v61  ;;  %v399_v47 = vld [vmem:[%s5191_s29 + $0x28] sm:$0xff]  ;;  %v600_v61 = vpack.c.bf16 %v425_v60, %v400_v59  ;;  %v448_v7 = vld [vmem:[%s5191_s29 + $0x1b0] sm:$0xff]  ;;  %v4788_v20 = vld [vmem:[%s6090_s1 + $0x258] sm:$0xff]  }
  0x2a   : > { %4161 = vmatprep.subr.bf16.mxu1 %v4750_v50  ;;  %v4775_v50 = vld [vmem:[%s6090_s1 + $0x1b8] sm:$0xff]   ;;  %v476_v12 = vld [vmem:[%s5191_s29 + $0x290] sm:$0xff]  ;;  %v498_v27 = vld [vmem:[%s5191_s29 + $0x340] sm:$0xff] }
  0x2b   : > { %4122 = vmatpush3.bf16.msra.mxu0 %v4749_v49  ;;  %v599_v49 = vpack.c.bf16 %v424_v48, %v399_v47  ;;  %v4787_v19 = vld [vmem:[%s6090_s1 + $0x290] sm:$0xff]   ;;  %v523_v28 = vld [vmem:[%s5191_s29 + $0x408] sm:$0xff]  ;;  %v501_v31 = vld [vmem:[%s5191_s29 + $0x358] sm:$0xff] }
  0x2c   : > { %4123 = vmatprep.subr.bf16.mxu0 %v4752_v58  ;;  %v4777_v58 = vld [vmem:[%s6090_s1 + $0x200] sm:$0xff]   ;;  %v500_v35 = vld [vmem:[%s5191_s29 + $0x350] sm:$0xff]  ;;  %v525_v36 = vld [vmem:[%s5191_s29 + $0x418] sm:$0xff] }
  0x2d   : > { %4162 = vmatpush3.bf16.msra.mxu1 %v4751_v54  ;;  %v4776_v54 = vld [vmem:[%s6090_s1 + $0x240] sm:$0xff]   ;;  %v4796_v40 = vld [vmem:[%s6090_s1 + $0x268] sm:$0xff]   ;;  %v548_v47 = vld [vmem:[%s5191_s29 + $0x4d0] sm:$0xff] }
  0x2e   : > { %2323 = vmatmul.mubr.bf16.gmra.mrb[4].mxu0 %v619_v57  ;;  %4163 = vmatprep.subr.bf16.mxu1 %v4754_v2  ;;  %v601_v57 = vpack.c.bf16 %v426_v56, %v401_v55  ;;  %v4782_v2 = vld [vmem:[%s6090_s1 + $0x2c8] sm:$0xff]   ;;  %v526_v32 = vld [vmem:[%s5191_s29 + $0x420] sm:$0xff]  ;;  %v573_v48 = vld [vmem:[%s5191_s29 + $0x598] sm:$0xff] }
  0x2f   : > { %4124 = vmatpush3.bf16.msra.mxu0 %v4753_v62  ;;  %2330 = vmatprep.mubr.bf16.mxu0 %v645_v9  ;;  %v4778_v62 = vld [vmem:[%s6090_s1 + $0x2c0] sm:$0xff]   ;;  %v623_v9 = vpack.c.bf16 %v473_v8, %v448_v7  ;;  %v551_v51 = vld [vmem:[%s5191_s29 + $0x4e8] sm:$0xff]  ;;  %v576_v52 = vld [vmem:[%s5191_s29 + $0x5b0] sm:$0xff] }
  0x30   : > { %2388 = vmatmul.mubr.bf16.gmra.mrb[4].mxu1 %v621_v1  ;;  %4125 = vmatprep.subr.bf16.mxu0 %v4756_v4  ;;  %v4781_v1 = vld [vmem:[%s6090_s1 + $0x208] sm:$0xff]   ;;  %v474_v4 = vld [vmem:[%s5191_s29 + $0x280] sm:$0xff]  ;;  %v4803_v59 = vld [vmem:[%s6090_s1 + $0x2b0] sm:$0xff]  }
  0x31   : > { %4164 = vmatpush3.bf16.msra.mxu1 %v4755_v3  ;;  %2395 = vmatprep.mubr.bf16.mxu1 %v647_v17  ;;  %v449_v3 = vld [vmem:[%s5191_s29 + $0x1b8] sm:$0xff]  ;;  %v625_v17 = vpack.c.bf16 %v475_v16, %v450_v15  ;;  %v4795_v39 = vld [vmem:[%s6090_s1 + $0x2a0] sm:$0xff]   ;;  %v575_v56 = vld [vmem:[%s5191_s29 + $0x5a8] sm:$0xff] }
  0x32   : > { %4165 = vmatprep.subr.bf16.mxu1 %v4758_v6  ;;  %v4783_v6 = vld [vmem:[%s6090_s1 + $0x288] sm:$0xff]   ;;  %v550_v55 = vld [vmem:[%s5191_s29 + $0x4e0] sm:$0xff]  ;;  %v4804_v60 = vld [vmem:[%s6090_s1 + $0x278] sm:$0xff]  }
  0x33   : > { %4126 = vmatpush3.bf16.msra.mxu0 %v4757_v5  ;;  %v624_v5 = vpack.c.bf16 %v474_v4, %v449_v3  ;;  %v402_v3 = vld [vmem:[%s5191_s29 + $0x40] sm:$0xff]  ;;  %v427_v4 = vld [vmem:[%s5191_s29 + $0x108] sm:$0xff]  ;;  %v405_v7 = vld [vmem:[%s5191_s29 + $0x58] sm:$0xff] }
  0x34   : > { %4127 = vmatprep.subr.bf16.mxu0 %v4760_v14  ;;  %v4785_v14 = vld [vmem:[%s6090_s1 + $0x210] sm:$0xff]   ;;  %v430_v8 = vld [vmem:[%s5191_s29 + $0x120] sm:$0xff]  ;;  %v4812_v16 = vld [vmem:[%s6090_s1 + $0x348] sm:$0xff]  }
  0x35   : > { %4166 = vmatpush3.bf16.msra.mxu1 %v4759_v10  ;;  %v4784_v10 = vld [vmem:[%s6090_s1 + $0x250] sm:$0xff]   ;;  %v4811_v15 = vld [vmem:[%s6090_s1 + $0x380] sm:$0xff]  }
  0x36   : > { %2331 = vmatmul.mubr.bf16.gmra.mrb[8].mxu0 %v644_v13  ;;  %4167 = vmatprep.subr.bf16.mxu1 %v4762_v22  ;;  %v626_v13 = vpack.c.bf16 %v476_v12, %v451_v11  ;;  %v4790_v22 = vld [vmem:[%s6090_s1 + $0x2d8] sm:$0xff]   ;;  %v404_v11 = vld [vmem:[%s5191_s29 + $0x50] sm:$0xff] }
  0x37   : > { %4128 = vmatpush3.bf16.msra.mxu0 %v4761_v18  ;;  %2338 = vmatprep.mubr.bf16.mxu0 %v670_v29  ;;  %v4786_v18 = vld [vmem:[%s6090_s1 + $0x2d0] sm:$0xff]   ;;  %v648_v29 = vpack.c.bf16 %v523_v28, %v498_v27  ;;  %v429_v12 = vld [vmem:[%s5191_s29 + $0x118] sm:$0xff]  ;;  %v455_v27 = vld [vmem:[%s5191_s29 + $0x1e8] sm:$0xff] }
  0x38   : > { %2396 = vmatmul.mubr.bf16.gmra.mrb[8].mxu1 %v646_v21  ;;  %4129 = vmatprep.subr.bf16.mxu0 %v4764_v24  ;;  %v4789_v21 = vld [vmem:[%s6090_s1 + $0x218] sm:$0xff]   ;;  %v524_v24 = vld [vmem:[%s5191_s29 + $0x410] sm:$0xff] }
  0x39   : > { %4168 = vmatpush3.bf16.msra.mxu1 %v4763_v23  ;;  %2403 = vmatprep.mubr.bf16.mxu1 %v672_v37  ;;  %v499_v23 = vld [vmem:[%s5191_s29 + $0x348] sm:$0xff]  ;;  %v650_v37 = vpack.c.bf16 %v525_v36, %v500_v35  ;;  %v480_v28 = vld [vmem:[%s5191_s29 + $0x2b0] sm:$0xff]  ;;  %v4820_v36 = vld [vmem:[%s6090_s1 + $0x358] sm:$0xff]  }
  0x3a   : > { %4169 = vmatprep.subr.bf16.mxu1 %v4766_v26  ;;  %v4791_v26 = vld [vmem:[%s6090_s1 + $0x298] sm:$0xff]   ;;  %v4819_v35 = vld [vmem:[%s6090_s1 + $0x390] sm:$0xff]  }
  0x3b   : > { %4130 = vmatpush3.bf16.msra.mxu0 %v4765_v25  ;;  %v649_v25 = vpack.c.bf16 %v524_v24, %v499_v23  ;;  %v452_v23 = vld [vmem:[%s5191_s29 + $0x1d0] sm:$0xff]  ;;  %v477_v24 = vld [vmem:[%s5191_s29 + $0x298] sm:$0xff] }
  0x3c   : > { %4131 = vmatprep.subr.bf16.mxu0 %v4768_v34  ;;  %v4793_v34 = vld [vmem:[%s6090_s1 + $0x220] sm:$0xff]  }
  0x3d   : > { %4170 = vmatpush3.bf16.msra.mxu1 %v4767_v30  ;;  %v4792_v30 = vld [vmem:[%s6090_s1 + $0x260] sm:$0xff]  }
  0x3e   : > { %2339 = vmatmul.mubr.bf16.gmra.mrb[12].mxu0 %v669_v33  ;;  %4171 = vmatprep.subr.bf16.mxu1 %v4770_v42  ;;  %v651_v33 = vpack.c.bf16 %v526_v32, %v501_v31  ;;  %v4798_v42 = vld [vmem:[%s6090_s1 + $0x2e8] sm:$0xff]   ;;  %v454_v31 = vld [vmem:[%s5191_s29 + $0x1e0] sm:$0xff] }
  0x3f   : > { %4132 = vmatpush3.bf16.msra.mxu0 %v4769_v38  ;;  %2444 = vmatprep.mubr.bf16.mxu0 %v599_v49  ;;  %v4794_v38 = vld [vmem:[%s6090_s1 + $0x2e0] sm:$0xff]   ;;  %v673_v49 = vpack.c.bf16 %v573_v48, %v548_v47  ;;  %v479_v32 = vld [vmem:[%s5191_s29 + $0x2a8] sm:$0xff]  ;;  %v505_v47 = vld [vmem:[%s5191_s29 + $0x378] sm:$0xff] }
  0x40   : > { %2404 = vmatmul.mubr.bf16.gmra.mrb[12].mxu1 %v671_v41  ;;  %4133 = vmatprep.subr.bf16.mxu0 %v4772_v44  ;;  %v4797_v41 = vld [vmem:[%s6090_s1 + $0x228] sm:$0xff]   ;;  %v574_v44 = vld [vmem:[%s5191_s29 + $0x5a0] sm:$0xff] }
  0x41   : > { %4172 = vmatpush3.bf16.msra.mxu1 %v4771_v43  ;;  %2509 = vmatprep.mubr.bf16.mxu1 %v601_v57  ;;  %v549_v43 = vld [vmem:[%s5191_s29 + $0x4d8] sm:$0xff]  ;;  %v675_v57 = vpack.c.bf16 %v575_v56, %v550_v55  ;;  %v530_v48 = vld [vmem:[%s5191_s29 + $0x440] sm:$0xff]  ;;  %v4828_v56 = vld [vmem:[%s6090_s1 + $0x368] sm:$0xff]  }
  0x42   : > { %4173 = vmatprep.subr.bf16.mxu1 %v4774_v46  ;;  %v4799_v46 = vld [vmem:[%s6090_s1 + $0x2a8] sm:$0xff]   ;;  %v4827_v55 = vld [vmem:[%s6090_s1 + $0x3a0] sm:$0xff]  }
  0x43   : > { %4134 = vmatpush3.bf16.msra.mxu0 %v4773_v45  ;;  %v674_v45 = vpack.c.bf16 %v574_v44, %v549_v43  ;;  %v502_v43 = vld [vmem:[%s5191_s29 + $0x360] sm:$0xff]  ;;  %v527_v44 = vld [vmem:[%s5191_s29 + $0x428] sm:$0xff] }
  0x44   : > { %4199 = vmatprep.subr.bf16.mxu0 %v4776_v54  ;;  %v4801_v54 = vld [vmem:[%s6090_s1 + $0x230] sm:$0xff]  }
  0x45   : > { %4174 = vmatpush3.bf16.msra.mxu1 %v4775_v50  ;;  %v4800_v50 = vld [vmem:[%s6090_s1 + $0x270] sm:$0xff]  }
  0x46   : > { %2445 = vmatmul.mubr.bf16.vlgmr.msra.gmra.mrb[16].mxu0 %v598_v53  ;;  %4239 = vmatprep.subr.bf16.mxu1 %v4778_v62  ;;  %v676_v53 = vpack.c.bf16 %v576_v52, %v551_v51  ;;  %v4806_v62 = vld [vmem:[%s6090_s1 + $0x2f8] sm:$0xff]   ;;  %v504_v51 = vld [vmem:[%s5191_s29 + $0x370] sm:$0xff] }
  0x47   : > { %4200 = vmatpush3.bf16.msra.mxu0 %v4777_v58  ;;  %2452 = vmatprep.mubr.bf16.mxu0 %v624_v5  ;;  %v4802_v58 = vld [vmem:[%s6090_s1 + $0x2f0] sm:$0xff]   ;;  %v602_v5 = vpack.c.bf16 %v427_v4, %v402_v3  ;;  %v529_v52 = vld [vmem:[%s5191_s29 + $0x438] sm:$0xff]  ;;  %v555_v3 = vld [vmem:[%s5191_s29 + $0x508] sm:$0xff] }
  0x48   : > { %2510 = vmatmul.mubr.bf16.vlgmr.msra.gmra.mrb[16].mxu1 %v600_v61  ;;  %4201 = vmatprep.subr.bf16.mxu0 %v4780_v0  ;;  %v4805_v61 = vld [vmem:[%s6090_s1 + $0x238] sm:$0xff]   ;;  %v428_v0 = vld [vmem:[%s5191_s29 + $0x110] sm:$0xff] }
  0x49   : > { %4240 = vmatpush3.bf16.msra.mxu1 %v4779_v63  ;;  %2517 = vmatprep.mubr.bf16.mxu1 %v626_v13  ;;  %v403_v63 = vld [vmem:[%s5191_s29 + $0x48] sm:$0xff]  ;;  %v604_v13 = vpack.c.bf16 %v429_v12, %v404_v11  ;;  %v580_v4 = vld [vmem:[%s5191_s29 + $0x5d0] sm:$0xff]  ;;  %v4836_v12 = vld [vmem:[%s6090_s1 + $0x378] sm:$0xff]  }
  0x4a   : > { %4241 = vmatprep.subr.bf16.mxu1 %v4782_v2  ;;  %v4807_v2 = vld [vmem:[%s6090_s1 + $0x2b8] sm:$0xff]   ;;  %v4835_v11 = vld [vmem:[%s6090_s1 + $0x3b0] sm:$0xff]  }
  0x4b   : > { %4202 = vmatpush3.bf16.msra.mxu0 %v4781_v1  ;;  %v603_v1 = vpack.c.bf16 %v428_v0, %v403_v63  ;;  %v552_v63 = vld [vmem:[%s5191_s29 + $0x4f0] sm:$0xff]  ;;  %v577_v0 = vld [vmem:[%s5191_s29 + $0x5b8] sm:$0xff] }
  0x4c   : > { %4203 = vmatprep.subr.bf16.mxu0 %v4784_v10  ;;  %v4809_v10 = vld [vmem:[%s6090_s1 + $0x300] sm:$0xff]  }
  0x4d   : > { %4242 = vmatpush3.bf16.msra.mxu1 %v4783_v6  ;;  %v4808_v6 = vld [vmem:[%s6090_s1 + $0x340] sm:$0xff]  }
  0x4e   : > { %2453 = vmatmul.mubr.bf16.gmra.mrb[20].mxu0 %v623_v9  ;;  %4243 = vmatprep.subr.bf16.mxu1 %v4786_v18  ;;  %v605_v9 = vpack.c.bf16 %v430_v8, %v405_v7  ;;  %v4814_v18 = vld [vmem:[%s6090_s1 + $0x3c8] sm:$0xff]   ;;  %v554_v7 = vld [vmem:[%s5191_s29 + $0x500] sm:$0xff] }
  0x4f   : > { %4204 = vmatpush3.bf16.msra.mxu0 %v4785_v14  ;;  %2460 = vmatprep.mubr.bf16.mxu0 %v649_v25  ;;  %v4810_v14 = vld [vmem:[%s6090_s1 + $0x3c0] sm:$0xff]   ;;  %v627_v25 = vpack.c.bf16 %v477_v24, %v452_v23  ;;  %v579_v8 = vld [vmem:[%s5191_s29 + $0x5c8] sm:$0xff]  ;;  %v409_v23 = vld [vmem:[%s5191_s29 + $0x78] sm:$0xff] }
  0x50   : > { %2518 = vmatmul.mubr.bf16.gmra.mrb[20].mxu1 %v625_v17  ;;  %4205 = vmatprep.subr.bf16.mxu0 %v4788_v20  ;;  %v4813_v17 = vld [vmem:[%s6090_s1 + $0x308] sm:$0xff]   ;;  %v478_v20 = vld [vmem:[%s5191_s29 + $0x2a0] sm:$0xff] }
  0x51   : > { %4244 = vmatpush3.bf16.msra.mxu1 %v4787_v19  ;;  %2525 = vmatprep.mubr.bf16.mxu1 %v651_v33  ;;  %v453_v19 = vld [vmem:[%s5191_s29 + $0x1d8] sm:$0xff]  ;;  %v629_v33 = vpack.c.bf16 %v479_v32, %v454_v31  ;;  %v434_v24 = vld [vmem:[%s5191_s29 + $0x140] sm:$0xff]  ;;  %v4844_v32 = vld [vmem:[%s6090_s1 + $0x448] sm:$0xff]  }
  0x52   : > { %4245 = vmatprep.subr.bf16.mxu1 %v4790_v22  ;;  %v4815_v22 = vld [vmem:[%s6090_s1 + $0x388] sm:$0xff]   ;;  %v4843_v31 = vld [vmem:[%s6090_s1 + $0x480] sm:$0xff]  }
  0x53   : > { %4206 = vmatpush3.bf16.msra.mxu0 %v4789_v21  ;;  %v628_v21 = vpack.c.bf16 %v478_v20, %v453_v19  ;;  %v406_v19 = vld [vmem:[%s5191_s29 + $0x60] sm:$0xff]  ;;  %v431_v20 = vld [vmem:[%s5191_s29 + $0x128] sm:$0xff] }
  0x54   : > { %4207 = vmatprep.subr.bf16.mxu0 %v4792_v30  ;;  %v4817_v30 = vld [vmem:[%s6090_s1 + $0x310] sm:$0xff]  }
  0x55   : > { %4246 = vmatpush3.bf16.msra.mxu1 %v4791_v26  ;;  %v4816_v26 = vld [vmem:[%s6090_s1 + $0x350] sm:$0xff]  }
  0x56   : > { %2461 = vmatmul.mubr.bf16.gmra.mrb[24].mxu0 %v648_v29  ;;  %4247 = vmatprep.subr.bf16.mxu1 %v4794_v38  ;;  %v630_v29 = vpack.c.bf16 %v480_v28, %v455_v27  ;;  %v4822_v38 = vld [vmem:[%s6090_s1 + $0x3d8] sm:$0xff]   ;;  %v408_v27 = vld [vmem:[%s5191_s29 + $0x70] sm:$0xff] }
  0x57   : > { %4208 = vmatpush3.bf16.msra.mxu0 %v4793_v34  ;;  %2468 = vmatprep.mubr.bf16.mxu0 %v674_v45  ;;  %v4818_v34 = vld [vmem:[%s6090_s1 + $0x3d0] sm:$0xff]   ;;  %v652_v45 = vpack.c.bf16 %v527_v44, %v502_v43  ;;  %v433_v28 = vld [vmem:[%s5191_s29 + $0x138] sm:$0xff]  ;;  %v459_v43 = vld [vmem:[%s5191_s29 + $0x208] sm:$0xff] }
  0x58   : > { %2526 = vmatmul.mubr.bf16.gmra.mrb[24].mxu1 %v650_v37  ;;  %4209 = vmatprep.subr.bf16.mxu0 %v4796_v40  ;;  %v4821_v37 = vld [vmem:[%s6090_s1 + $0x318] sm:$0xff]   ;;  %v528_v40 = vld [vmem:[%s5191_s29 + $0x430] sm:$0xff] }
  0x59   : > { %4248 = vmatpush3.bf16.msra.mxu1 %v4795_v39  ;;  %2533 = vmatprep.mubr.bf16.mxu1 %v676_v53  ;;  %v503_v39 = vld [vmem:[%s5191_s29 + $0x368] sm:$0xff]  ;;  %v654_v53 = vpack.c.bf16 %v529_v52, %v504_v51  ;;  %v484_v44 = vld [vmem:[%s5191_s29 + $0x2d0] sm:$0xff]  ;;  %v4852_v52 = vld [vmem:[%s6090_s1 + $0x458] sm:$0xff]  }
  0x5a   : > { %4249 = vmatprep.subr.bf16.mxu1 %v4798_v42  ;;  %v4823_v42 = vld [vmem:[%s6090_s1 + $0x398] sm:$0xff]   ;;  %v4851_v51 = vld [vmem:[%s6090_s1 + $0x490] sm:$0xff]  }
  0x5b   : > { %4210 = vmatpush3.bf16.msra.mxu0 %v4797_v41  ;;  %v653_v41 = vpack.c.bf16 %v528_v40, %v503_v39  ;;  %v456_v39 = vld [vmem:[%s5191_s29 + $0x1f0] sm:$0xff]  ;;  %v481_v40 = vld [vmem:[%s5191_s29 + $0x2b8] sm:$0xff] }
  0x5c   : > { %4211 = vmatprep.subr.bf16.mxu0 %v4800_v50  ;;  %v4825_v50 = vld [vmem:[%s6090_s1 + $0x320] sm:$0xff]  }
  0x5d   : > { %4250 = vmatpush3.bf16.msra.mxu1 %v4799_v46  ;;  %v4824_v46 = vld [vmem:[%s6090_s1 + $0x360] sm:$0xff]  }
  0x5e   : > { %2469 = vmatmul.mubr.bf16.gmra.mrb[28].mxu0 %v673_v49  ;;  %4251 = vmatprep.subr.bf16.mxu1 %v4802_v58  ;;  %v655_v49 = vpack.c.bf16 %v530_v48, %v505_v47  ;;  %v4830_v58 = vld [vmem:[%s6090_s1 + $0x3e8] sm:$0xff]   ;;  %v458_v47 = vld [vmem:[%s5191_s29 + $0x200] sm:$0xff] }
  0x5f   : > { %4212 = vmatpush3.bf16.msra.mxu0 %v4801_v54  ;;  %2574 = vmatprep.mubr.bf16.mxu0 %v603_v1  ;;  %v4826_v54 = vld [vmem:[%s6090_s1 + $0x3e0] sm:$0xff]   ;;  %v677_v1 = vpack.c.bf16 %v577_v0, %v552_v63  ;;  %v483_v48 = vld [vmem:[%s5191_s29 + $0x2c8] sm:$0xff]  ;;  %v509_v63 = vld [vmem:[%s5191_s29 + $0x398] sm:$0xff] }
  0x60   : > { %2534 = vmatmul.mubr.bf16.gmra.mrb[28].mxu1 %v675_v57  ;;  %4213 = vmatprep.subr.bf16.mxu0 %v4804_v60  ;;  %v4829_v57 = vld [vmem:[%s6090_s1 + $0x328] sm:$0xff]   ;;  %v578_v60 = vld [vmem:[%s5191_s29 + $0x5c0] sm:$0xff] }
  0x61   : > { %4252 = vmatpush3.bf16.msra.mxu1 %v4803_v59  ;;  %2639 = vmatprep.mubr.bf16.mxu1 %v605_v9  ;;  %v553_v59 = vld [vmem:[%s5191_s29 + $0x4f8] sm:$0xff]  ;;  %v679_v9 = vpack.c.bf16 %v579_v8, %v554_v7  ;;  %v534_v0 = vld [vmem:[%s5191_s29 + $0x460] sm:$0xff]  ;;  %v4860_v8 = vld [vmem:[%s6090_s1 + $0x468] sm:$0xff]  }
  0x62   : > { %4253 = vmatprep.subr.bf16.mxu1 %v4806_v62  ;;  %v4831_v62 = vld [vmem:[%s6090_s1 + $0x3a8] sm:$0xff]   ;;  %v4859_v7 = vld [vmem:[%s6090_s1 + $0x4a0] sm:$0xff]  }
  0x63   : > { %4214 = vmatpush3.bf16.msra.mxu0 %v4805_v61  ;;  %v678_v61 = vpack.c.bf16 %v578_v60, %v553_v59  ;;  %v506_v59 = vld [vmem:[%s5191_s29 + $0x380] sm:$0xff]  ;;  %v531_v60 = vld [vmem:[%s5191_s29 + $0x448] sm:$0xff] }
  0x64   : > { %4279 = vmatprep.subr.bf16.mxu0 %v4808_v6  ;;  %v4833_v6 = vld [vmem:[%s6090_s1 + $0x330] sm:$0xff]  }
  0x65   : > { %4254 = vmatpush3.bf16.msra.mxu1 %v4807_v2  ;;  %v4832_v2 = vld [vmem:[%s6090_s1 + $0x370] sm:$0xff]  }
  0x66   : > { %2575 = vmatmul.mubr.bf16.vlgmr.msra.gmra.mrb[32].mxu0 %v602_v5  ;;  %4319 = vmatprep.subr.bf16.mxu1 %v4810_v14  ;;  %v680_v5 = vpack.c.bf16 %v580_v4, %v555_v3  ;;  %v4838_v14 = vld [vmem:[%s6090_s1 + $0x3f8] sm:$0xff]   ;;  %v508_v3 = vld [vmem:[%s5191_s29 + $0x390] sm:$0xff] }
  0x67   : > { %4280 = vmatpush3.bf16.msra.mxu0 %v4809_v10  ;;  %2582 = vmatprep.mubr.bf16.mxu0 %v628_v21  ;;  %v4834_v10 = vld [vmem:[%s6090_s1 + $0x3f0] sm:$0xff]   ;;  %v606_v21 = vpack.c.bf16 %v431_v20, %v406_v19  ;;  %v533_v4 = vld [vmem:[%s5191_s29 + $0x458] sm:$0xff]  ;;  %v559_v19 = vld [vmem:[%s5191_s29 + $0x528] sm:$0xff] }
  0x68   : > { %2640 = vmatmul.mubr.bf16.vlgmr.msra.gmra.mrb[32].mxu1 %v604_v13  ;;  %4281 = vmatprep.subr.bf16.mxu0 %v4812_v16  ;;  %v4837_v13 = vld [vmem:[%s6090_s1 + $0x338] sm:$0xff]   ;;  %v432_v16 = vld [vmem:[%s5191_s29 + $0x130] sm:$0xff] }
  0x69   : > { %4320 = vmatpush3.bf16.msra.mxu1 %v4811_v15  ;;  %2647 = vmatprep.mubr.bf16.mxu1 %v630_v29  ;;  %v407_v15 = vld [vmem:[%s5191_s29 + $0x68] sm:$0xff]  ;;  %v608_v29 = vpack.c.bf16 %v433_v28, %v408_v27  ;;  %v584_v20 = vld [vmem:[%s5191_s29 + $0x5f0] sm:$0xff]  ;;  %v4868_v28 = vld [vmem:[%s6090_s1 + $0x478] sm:$0xff]  }
  0x6a   : > { %4321 = vmatprep.subr.bf16.mxu1 %v4814_v18  ;;  %v4839_v18 = vld [vmem:[%s6090_s1 + $0x3b8] sm:$0xff]   ;;  %v4867_v27 = vld [vmem:[%s6090_s1 + $0x4b0] sm:$0xff]  }
  0x6b   : > { %4282 = vmatpush3.bf16.msra.mxu0 %v4813_v17  ;;  %v607_v17 = vpack.c.bf16 %v432_v16, %v407_v15  ;;  %v556_v15 = vld [vmem:[%s5191_s29 + $0x510] sm:$0xff]  ;;  %v581_v16 = vld [vmem:[%s5191_s29 + $0x5d8] sm:$0xff] }
  0x6c   : > { %4283 = vmatprep.subr.bf16.mxu0 %v4816_v26  ;;  %v4841_v26 = vld [vmem:[%s6090_s1 + $0x400] sm:$0xff]  }
  0x6d   : > { %4322 = vmatpush3.bf16.msra.mxu1 %v4815_v22  ;;  %v4840_v22 = vld [vmem:[%s6090_s1 + $0x440] sm:$0xff]  }
  0x6e   : > { %2583 = vmatmul.mubr.bf16.gmra.mrb[36].mxu0 %v627_v25  ;;  %4323 = vmatprep.subr.bf16.mxu1 %v4818_v34  ;;  %v609_v25 = vpack.c.bf16 %v434_v24, %v409_v23  ;;  %v4846_v34 = vld [vmem:[%s6090_s1 + $0x4c8] sm:$0xff]   ;;  %v558_v23 = vld [vmem:[%s5191_s29 + $0x520] sm:$0xff] }
  0x6f   : > { %4284 = vmatpush3.bf16.msra.mxu0 %v4817_v30  ;;  %2590 = vmatprep.mubr.bf16.mxu0 %v653_v41  ;;  %v4842_v30 = vld [vmem:[%s6090_s1 + $0x4c0] sm:$0xff]   ;;  %v631_v41 = vpack.c.bf16 %v481_v40, %v456_v39  ;;  %v583_v24 = vld [vmem:[%s5191_s29 + $0x5e8] sm:$0xff]  ;;  %v413_v39 = vld [vmem:[%s5191_s29 + $0x98] sm:$0xff] }
  0x70   : > { %2648 = vmatmul.mubr.bf16.gmra.mrb[36].mxu1 %v629_v33  ;;  %4285 = vmatprep.subr.bf16.mxu0 %v4820_v36  ;;  %v4845_v33 = vld [vmem:[%s6090_s1 + $0x408] sm:$0xff]   ;;  %v482_v36 = vld [vmem:[%s5191_s29 + $0x2c0] sm:$0xff] }
  0x71   : > { %4324 = vmatpush3.bf16.msra.mxu1 %v4819_v35  ;;  %2655 = vmatprep.mubr.bf16.mxu1 %v655_v49  ;;  %v457_v35 = vld [vmem:[%s5191_s29 + $0x1f8] sm:$0xff]  ;;  %v633_v49 = vpack.c.bf16 %v483_v48, %v458_v47  ;;  %v438_v40 = vld [vmem:[%s5191_s29 + $0x160] sm:$0xff]  ;;  %v4876_v48 = vld [vmem:[%s6090_s1 + $0x548] sm:$0xff]  }
  0x72   : > { %4325 = vmatprep.subr.bf16.mxu1 %v4822_v38  ;;  %v4847_v38 = vld [vmem:[%s6090_s1 + $0x488] sm:$0xff]   ;;  %v4875_v47 = vld [vmem:[%s6090_s1 + $0x580] sm:$0xff]  }
  0x73   : > { %4286 = vmatpush3.bf16.msra.mxu0 %v4821_v37  ;;  %v632_v37 = vpack.c.bf16 %v482_v36, %v457_v35  ;;  %v410_v35 = vld [vmem:[%s5191_s29 + $0x80] sm:$0xff]  ;;  %v435_v36 = vld [vmem:[%s5191_s29 + $0x148] sm:$0xff] }
  0x74   : > { %4287 = vmatprep.subr.bf16.mxu0 %v4824_v46  ;;  %v4849_v46 = vld [vmem:[%s6090_s1 + $0x410] sm:$0xff]  }
  0x75   : > { %4326 = vmatpush3.bf16.msra.mxu1 %v4823_v42  ;;  %v4848_v42 = vld [vmem:[%s6090_s1 + $0x450] sm:$0xff]  }
  0x76   : > { %2591 = vmatmul.mubr.bf16.gmra.mrb[40].mxu0 %v652_v45  ;;  %4327 = vmatprep.subr.bf16.mxu1 %v4826_v54  ;;  %v634_v45 = vpack.c.bf16 %v484_v44, %v459_v43  ;;  %v4854_v54 = vld [vmem:[%s6090_s1 + $0x4d8] sm:$0xff]   ;;  %v412_v43 = vld [vmem:[%s5191_s29 + $0x90] sm:$0xff] }
  0x77   : > { %4288 = vmatpush3.bf16.msra.mxu0 %v4825_v50  ;;  %2598 = vmatprep.mubr.bf16.mxu0 %v678_v61  ;;  %v4850_v50 = vld [vmem:[%s6090_s1 + $0x4d0] sm:$0xff]   ;;  %v656_v61 = vpack.c.bf16 %v531_v60, %v506_v59  ;;  %v437_v44 = vld [vmem:[%s5191_s29 + $0x158] sm:$0xff]  ;;  %v463_v59 = vld [vmem:[%s5191_s29 + $0x228] sm:$0xff] }
  0x78   : > { %2656 = vmatmul.mubr.bf16.gmra.mrb[40].mxu1 %v654_v53  ;;  %4289 = vmatprep.subr.bf16.mxu0 %v4828_v56  ;;  %v4853_v53 = vld [vmem:[%s6090_s1 + $0x418] sm:$0xff]   ;;  %v532_v56 = vld [vmem:[%s5191_s29 + $0x450] sm:$0xff] }
  0x79   : > { %4328 = vmatpush3.bf16.msra.mxu1 %v4827_v55  ;;  %2663 = vmatprep.mubr.bf16.mxu1 %v680_v5  ;;  %v507_v55 = vld [vmem:[%s5191_s29 + $0x388] sm:$0xff]  ;;  %v658_v5 = vpack.c.bf16 %v533_v4, %v508_v3  ;;  %v488_v60 = vld [vmem:[%s5191_s29 + $0x2f0] sm:$0xff]  ;;  %v4884_v4 = vld [vmem:[%s6090_s1 + $0x558] sm:$0xff]  }
  0x7a   : > { %4329 = vmatprep.subr.bf16.mxu1 %v4830_v58  ;;  %v4855_v58 = vld [vmem:[%s6090_s1 + $0x498] sm:$0xff]   ;;  %v4883_v3 = vld [vmem:[%s6090_s1 + $0x590] sm:$0xff]  }
  0x7b   : > { %4290 = vmatpush3.bf16.msra.mxu0 %v4829_v57  ;;  %v657_v57 = vpack.c.bf16 %v532_v56, %v507_v55  ;;  %v460_v55 = vld [vmem:[%s5191_s29 + $0x210] sm:$0xff]  ;;  %v485_v56 = vld [vmem:[%s5191_s29 + $0x2d8] sm:$0xff] }
  0x7c   : > { %4291 = vmatprep.subr.bf16.mxu0 %v4832_v2  ;;  %v4857_v2 = vld [vmem:[%s6090_s1 + $0x420] sm:$0xff]  }
  0x7d   : > { %4330 = vmatpush3.bf16.msra.mxu1 %v4831_v62  ;;  %v4856_v62 = vld [vmem:[%s6090_s1 + $0x460] sm:$0xff]  }
  0x7e   : > { %2599 = vmatmul.mubr.bf16.gmra.mrb[44].mxu0 %v677_v1  ;;  %4331 = vmatprep.subr.bf16.mxu1 %v4834_v10  ;;  %v659_v1 = vpack.c.bf16 %v534_v0, %v509_v63  ;;  %v4862_v10 = vld [vmem:[%s6090_s1 + $0x4e8] sm:$0xff]   ;;  %v462_v63 = vld [vmem:[%s5191_s29 + $0x220] sm:$0xff] }
  0x7f   : > { %4292 = vmatpush3.bf16.msra.mxu0 %v4833_v6  ;;  %2704 = vmatprep.mubr.bf16.mxu0 %v607_v17  ;;  %v4858_v6 = vld [vmem:[%s6090_s1 + $0x4e0] sm:$0xff]   ;;  %v681_v17 = vpack.c.bf16 %v581_v16, %v556_v15  ;;  %v487_v0 = vld [vmem:[%s5191_s29 + $0x2e8] sm:$0xff]  ;;  %v513_v15 = vld [vmem:[%s5191_s29 + $0x3b8] sm:$0xff] }
  0x80   : > { %2664 = vmatmul.mubr.bf16.gmra.mrb[44].mxu1 %v679_v9  ;;  %4293 = vmatprep.subr.bf16.mxu0 %v4836_v12  ;;  %v4861_v9 = vld [vmem:[%s6090_s1 + $0x428] sm:$0xff]   ;;  %v582_v12 = vld [vmem:[%s5191_s29 + $0x5e0] sm:$0xff] }
  0x81   : > { %4332 = vmatpush3.bf16.msra.mxu1 %v4835_v11  ;;  %2769 = vmatprep.mubr.bf16.mxu1 %v609_v25  ;;  %v557_v11 = vld [vmem:[%s5191_s29 + $0x518] sm:$0xff]  ;;  %v683_v25 = vpack.c.bf16 %v583_v24, %v558_v23  ;;  %v538_v16 = vld [vmem:[%s5191_s29 + $0x480] sm:$0xff]  ;;  %v4892_v24 = vld [vmem:[%s6090_s1 + $0x568] sm:$0xff]  }
  0x82   : > { %4333 = vmatprep.subr.bf16.mxu1 %v4838_v14  ;;  %v4863_v14 = vld [vmem:[%s6090_s1 + $0x4a8] sm:$0xff]   ;;  %v4891_v23 = vld [vmem:[%s6090_s1 + $0x5a0] sm:$0xff]  }
  0x83   : > { %4294 = vmatpush3.bf16.msra.mxu0 %v4837_v13  ;;  %v682_v13 = vpack.c.bf16 %v582_v12, %v557_v11  ;;  %v510_v11 = vld [vmem:[%s5191_s29 + $0x3a0] sm:$0xff]  ;;  %v535_v12 = vld [vmem:[%s5191_s29 + $0x468] sm:$0xff] }
  0x84   : > { %4359 = vmatprep.subr.bf16.mxu0 %v4840_v22  ;;  %v4865_v22 = vld [vmem:[%s6090_s1 + $0x430] sm:$0xff]  }
  0x85   : > { %4334 = vmatpush3.bf16.msra.mxu1 %v4839_v18  ;;  %v4864_v18 = vld [vmem:[%s6090_s1 + $0x470] sm:$0xff]  }
  0x86   : > { %2705 = vmatmul.mubr.bf16.vlgmr.msra.gmra.mrb[48].mxu0 %v606_v21  ;;  %4399 = vmatprep.subr.bf16.mxu1 %v4842_v30  ;;  %v684_v21 = vpack.c.bf16 %v584_v20, %v559_v19  ;;  %v4870_v30 = vld [vmem:[%s6090_s1 + $0x4f8] sm:$0xff]   ;;  %v512_v19 = vld [vmem:[%s5191_s29 + $0x3b0] sm:$0xff] }
  0x87   : > { %4360 = vmatpush3.bf16.msra.mxu0 %v4841_v26  ;;  %2712 = vmatprep.mubr.bf16.mxu0 %v632_v37  ;;  %v4866_v26 = vld [vmem:[%s6090_s1 + $0x4f0] sm:$0xff]   ;;  %v610_v37 = vpack.c.bf16 %v435_v36, %v410_v35  ;;  %v537_v20 = vld [vmem:[%s5191_s29 + $0x478] sm:$0xff]  ;;  %v563_v35 = vld [vmem:[%s5191_s29 + $0x548] sm:$0xff] }
  0x88   : > { %2770 = vmatmul.mubr.bf16.vlgmr.msra.gmra.mrb[48].mxu1 %v608_v29  ;;  %4361 = vmatprep.subr.bf16.mxu0 %v4844_v32  ;;  %v4869_v29 = vld [vmem:[%s6090_s1 + $0x438] sm:$0xff]   ;;  %v436_v32 = vld [vmem:[%s5191_s29 + $0x150] sm:$0xff] }
  0x89   : > { %4400 = vmatpush3.bf16.msra.mxu1 %v4843_v31  ;;  %2777 = vmatprep.mubr.bf16.mxu1 %v634_v45  ;;  %v411_v31 = vld [vmem:[%s5191_s29 + $0x88] sm:$0xff]  ;;  %v612_v45 = vpack.c.bf16 %v437_v44, %v412_v43  ;;  %v588_v36 = vld [vmem:[%s5191_s29 + $0x610] sm:$0xff]  ;;  %v4900_v44 = vld [vmem:[%s6090_s1 + $0x578] sm:$0xff]  }
  0x8a   : > { %4401 = vmatprep.subr.bf16.mxu1 %v4846_v34  ;;  %v4871_v34 = vld [vmem:[%s6090_s1 + $0x4b8] sm:$0xff]   ;;  %v4899_v43 = vld [vmem:[%s6090_s1 + $0x5b0] sm:$0xff]  }
  0x8b   : > { %4362 = vmatpush3.bf16.msra.mxu0 %v4845_v33  ;;  %v611_v33 = vpack.c.bf16 %v436_v32, %v411_v31  ;;  %v560_v31 = vld [vmem:[%s5191_s29 + $0x530] sm:$0xff]  ;;  %v585_v32 = vld [vmem:[%s5191_s29 + $0x5f8] sm:$0xff] }
  0x8c   : > { %4363 = vmatprep.subr.bf16.mxu0 %v4848_v42  ;;  %v4873_v42 = vld [vmem:[%s6090_s1 + $0x500] sm:$0xff]  }
  0x8d   : > { %4402 = vmatpush3.bf16.msra.mxu1 %v4847_v38  ;;  %v4872_v38 = vld [vmem:[%s6090_s1 + $0x540] sm:$0xff]  }
  0x8e   : > { %2713 = vmatmul.mubr.bf16.gmra.mrb[52].mxu0 %v631_v41  ;;  %4403 = vmatprep.subr.bf16.mxu1 %v4850_v50  ;;  %v613_v41 = vpack.c.bf16 %v438_v40, %v413_v39  ;;  %v4878_v50 = vld [vmem:[%s6090_s1 + $0x5c8] sm:$0xff]   ;;  %v562_v39 = vld [vmem:[%s5191_s29 + $0x540] sm:$0xff] }
  0x8f   : > { %4364 = vmatpush3.bf16.msra.mxu0 %v4849_v46  ;;  %2720 = vmatprep.mubr.bf16.mxu0 %v657_v57  ;;  %v4874_v46 = vld [vmem:[%s6090_s1 + $0x5c0] sm:$0xff]   ;;  %v635_v57 = vpack.c.bf16 %v485_v56, %v460_v55  ;;  %v587_v40 = vld [vmem:[%s5191_s29 + $0x608] sm:$0xff]  ;;  %v417_v55 = vld [vmem:[%s5191_s29 + $0xb8] sm:$0xff] }
  0x90   : > { %2778 = vmatmul.mubr.bf16.gmra.mrb[52].mxu1 %v633_v49  ;;  %4365 = vmatprep.subr.bf16.mxu0 %v4852_v52  ;;  %v4877_v49 = vld [vmem:[%s6090_s1 + $0x508] sm:$0xff]   ;;  %v486_v52 = vld [vmem:[%s5191_s29 + $0x2e0] sm:$0xff] }
  0x91   : > { %4404 = vmatpush3.bf16.msra.mxu1 %v4851_v51  ;;  %2785 = vmatprep.mubr.bf16.mxu1 %v659_v1  ;;  %v461_v51 = vld [vmem:[%s5191_s29 + $0x218] sm:$0xff]  ;;  %v637_v1 = vpack.c.bf16 %v487_v0, %v462_v63  ;;  %v490_v0 = vld [vmem:[%s5191_s29 + $0x300] sm:$0xff] }
  0x92   : > { %4405 = vmatprep.subr.bf16.mxu1 %v4854_v54  ;;  %v4879_v54 = vld [vmem:[%s6090_s1 + $0x588] sm:$0xff]   ;;  %v465_v63 = vld [vmem:[%s5191_s29 + $0x238] sm:$0xff] }
  0x93   : > { %4366 = vmatpush3.bf16.msra.mxu0 %v4853_v53  ;;  %v636_v53 = vpack.c.bf16 %v486_v52, %v461_v51  ;;  %v414_v51 = vld [vmem:[%s5191_s29 + $0xa0] sm:$0xff]  ;;  %v439_v52 = vld [vmem:[%s5191_s29 + $0x168] sm:$0xff] }
  0x94   : > { %4367 = vmatprep.subr.bf16.mxu0 %v4856_v62  ;;  %v4881_v62 = vld [vmem:[%s6090_s1 + $0x510] sm:$0xff]  }
  0x95   : > { %4406 = vmatpush3.bf16.msra.mxu1 %v4855_v58  ;;  %v4880_v58 = vld [vmem:[%s6090_s1 + $0x550] sm:$0xff]  }
  0x96   : > { %2721 = vmatmul.mubr.bf16.gmra.mrb[56].mxu0 %v656_v61  ;;  %4407 = vmatprep.subr.bf16.mxu1 %v4858_v6  ;;  %v638_v61 = vpack.c.bf16 %v488_v60, %v463_v59  ;;  %v4886_v6 = vld [vmem:[%s6090_s1 + $0x5d8] sm:$0xff]  }
  0x97   : > { %4368 = vmatpush3.bf16.msra.mxu0 %v4857_v2  ;;  %2728 = vmatprep.mubr.bf16.mxu0 %v682_v13  ;;  %v4882_v2 = vld [vmem:[%s6090_s1 + $0x5d0] sm:$0xff]   ;;  %v660_v13 = vpack.c.bf16 %v535_v12, %v510_v11  ;;  %v441_v59 = vld [vmem:[%s5191_s29 + $0x178] sm:$0xff] }
  0x98   : > { %2786 = vmatmul.mubr.bf16.gmra.mrb[56].mxu1 %v658_v5  ;;  %4369 = vmatprep.subr.bf16.mxu0 %v4860_v8  ;;  %v4885_v5 = vld [vmem:[%s6090_s1 + $0x518] sm:$0xff]   ;;  %v536_v8 = vld [vmem:[%s5191_s29 + $0x470] sm:$0xff] }
  0x99   : > { %4408 = vmatpush3.bf16.msra.mxu1 %v4859_v7  ;;  %2793 = vmatprep.mubr.bf16.mxu1 %v684_v21  ;;  %v511_v7 = vld [vmem:[%s5191_s29 + $0x3a8] sm:$0xff]  ;;  %v662_v21 = vpack.c.bf16 %v537_v20, %v512_v19  ;;  %v540_v20 = vld [vmem:[%s5191_s29 + $0x490] sm:$0xff] }
  0x9a   : > { %4409 = vmatprep.subr.bf16.mxu1 %v4862_v10  ;;  %v4887_v10 = vld [vmem:[%s6090_s1 + $0x598] sm:$0xff]   ;;  %v491_v19 = vld [vmem:[%s5191_s29 + $0x308] sm:$0xff] }
  0x9b   : > { %4370 = vmatpush3.bf16.msra.mxu0 %v4861_v9  ;;  %v661_v9 = vpack.c.bf16 %v536_v8, %v511_v7  ;;  %v4905_v7 = vld [vmem:[%s6090_s1 + $0x608] sm:$0xff]  }
  0x9c   : > { %4371 = vmatprep.subr.bf16.mxu0 %v4864_v18  ;;  %v4889_v18 = vld [vmem:[%s6090_s1 + $0x520] sm:$0xff]   ;;  %v467_v8 = vld [vmem:[%s5191_s29 + $0x248] sm:$0xff] }
  0x9d   : > { %4410 = vmatpush3.bf16.msra.mxu1 %v4863_v14  ;;  %v4888_v14 = vld [vmem:[%s6090_s1 + $0x560] sm:$0xff]  }
  0x9e   : > { %2729 = vmatmul.mubr.bf16.gmra.mrb[60].mxu0 %v681_v17  ;;  %4411 = vmatprep.subr.bf16.mxu1 %v4866_v26  ;;  %v663_v17 = vpack.c.bf16 %v538_v16, %v513_v15  ;;  %v4894_v26 = vld [vmem:[%s6090_s1 + $0x5e8] sm:$0xff]  }
  0x9f   : > { %4372 = vmatpush3.bf16.msra.mxu0 %v4865_v22  ;;  %2834 = vmatprep.mubr.bf16.mxu0 %v611_v33  ;;  %v4890_v22 = vld [vmem:[%s6090_s1 + $0x5e0] sm:$0xff]   ;;  %v685_v33 = vpack.c.bf16 %v585_v32, %v560_v31  ;;  %v539_v31 = vld [vmem:[%s5191_s29 + $0x488] sm:$0xff]  ;;  %v4907_v32 = vld [vmem:[%s6090_s1 + $0x618] sm:$0xff]  }
  0xa0   : > { %2794 = vmatmul.mubr.bf16.gmra.mrb[60].mxu1 %v683_v25  ;;  %4373 = vmatprep.subr.bf16.mxu0 %v4868_v28  ;;  %v4893_v25 = vld [vmem:[%s6090_s1 + $0x528] sm:$0xff]   ;;  %v586_v28 = vld [vmem:[%s5191_s29 + $0x600] sm:$0xff] }
  0xa1   : > { %4412 = vmatpush3.bf16.msra.mxu1 %v4867_v27  ;;  %2899 = vmatprep.mubr.bf16.mxu1 %v613_v41  ;;  %v561_v27 = vld [vmem:[%s5191_s29 + $0x538] sm:$0xff]  ;;  %v687_v41 = vpack.c.bf16 %v587_v40, %v562_v39  ;;  %v516_v40 = vld [vmem:[%s5191_s29 + $0x3d0] sm:$0xff] }
  0xa2   : > { %4413 = vmatprep.subr.bf16.mxu1 %v4870_v30  ;;  %v4895_v30 = vld [vmem:[%s6090_s1 + $0x5a8] sm:$0xff]  }
  0xa3   : > { %4374 = vmatpush3.bf16.msra.mxu0 %v4869_v29  ;;  %v686_v29 = vpack.c.bf16 %v586_v28, %v561_v27  ;;  %v514_v28 = vld [vmem:[%s5191_s29 + $0x3c0] sm:$0xff] }
  0xa4   : > { %4439 = vmatprep.subr.bf16.mxu0 %v4872_v38  ;;  %v4897_v38 = vld [vmem:[%s6090_s1 + $0x530] sm:$0xff]   ;;  %v664_v39 = vpack.c.bf16 %v539_v31, %v514_v28 }
  0xa5   : > { %4414 = vmatpush3.bf16.msra.mxu1 %v4871_v34  ;;  %v4896_v34 = vld [vmem:[%s6090_s1 + $0x570] sm:$0xff]  }
  0xa6   : > { %2835 = vmatmul.mubr.bf16.vlgmr.msra.gmra.mrb[64].mxu0 %v610_v37  ;;  %4479 = vmatprep.subr.bf16.mxu1 %v4874_v46  ;;  %v688_v37 = vpack.c.bf16 %v588_v36, %v563_v35  ;;  %v4902_v46 = vld [vmem:[%s6090_s1 + $0x5f8] sm:$0xff]   ;;  %v590_v35 = vld [vmem:[%s5191_s29 + $0x620] sm:$0xff]  ;;  %v568_v31 = vld [vmem:[%s5191_s29 + $0x570] sm:$0xff] }
  0xa7   : > { %4440 = vmatpush3.bf16.msra.mxu0 %v4873_v42  ;;  %2842 = vmatprep.mubr.bf16.mxu0 %v636_v53  ;;  %v4898_v42 = vld [vmem:[%s6090_s1 + $0x5f0] sm:$0xff]   ;;  %v614_v53 = vpack.c.bf16 %v439_v52, %v414_v51 }
  0xa8   : > { %2900 = vmatmul.mubr.bf16.vlgmr.msra.gmra.mrb[64].mxu1 %v612_v45  ;;  %4441 = vmatprep.subr.bf16.mxu0 %v4876_v48  ;;  %v4901_v45 = vld [vmem:[%s6090_s1 + $0x538] sm:$0xff]   ;;  %v440_v48 = vld [vmem:[%s5191_s29 + $0x170] sm:$0xff] }
  0xa9   : > { %4480 = vmatpush3.bf16.msra.mxu1 %v4875_v47  ;;  %2907 = vmatprep.mubr.bf16.mxu1 %v638_v61  ;;  %v415_v47 = vld [vmem:[%s5191_s29 + $0xa8] sm:$0xff] }
  0xaa   : > { %4481 = vmatprep.subr.bf16.mxu1 %v4878_v50  ;;  %v4903_v50 = vld [vmem:[%s6090_s1 + $0x5b8] sm:$0xff]  }
  0xab   : > { %4442 = vmatpush3.bf16.msra.mxu0 %v4877_v49  ;;  %v615_v49 = vpack.c.bf16 %v440_v48, %v415_v47  ;;  %v5885_v47 = vld [vmem:[%s6091_s2] ss:$0 sm:$0xff] }
  0xac   : > { %4443 = vmatprep.subr.bf16.mxu0 %v4880_v58  ;;  %v416_v58 = vld [vmem:[%s5191_s29 + $0xb0] sm:$0xff] }
  0xad   : > { %4482 = vmatpush3.bf16.msra.mxu1 %v4879_v54  ;;  %v4904_v54 = vld [vmem:[%s6090_s1 + $0x600] sm:$0xff]  }
  0xae   : > { %2843 = vmatmul.mubr.bf16.gmra.mrb[68].mxu0 %v635_v57  ;;  %4483 = vmatprep.subr.bf16.mxu1 %v4882_v2  ;;  %v442_v57 = vld [vmem:[%s5191_s29 + $0x180] sm:$0xff] }
  0xaf   : > { %4444 = vmatpush3.bf16.msra.mxu0 %v4881_v62  ;;  %2850 = vmatprep.mubr.bf16.mxu0 %v661_v9  ;;  %v617_v61 = vpack.c.bf16 %v442_v57, %v417_v55  ;;  %v616_v62 = vpack.c.bf16 %v441_v59, %v416_v58  ;;  %v492_v9 = vld [vmem:[%s5191_s29 + $0x310] sm:$0xff]  ;;  %v589_v55 = vld [vmem:[%s5191_s29 + $0x618] sm:$0xff] }
  0xb0   : > { %2908 = vmatmul.mubr.bf16.gmra.mrb[68].mxu1 %v637_v1  ;;  %4445 = vmatprep.subr.bf16.mxu0 %v4884_v4  ;;  %v464_v1 = vld [vmem:[%s5191_s29 + $0x230] sm:$0xff]  ;;  %v640_v4 = vpack.c.bf16 %v490_v0, %v465_v63  ;;  %v642_v12 = vpack.c.bf16 %v492_v9, %v467_v8 }
  0xb1   : > { %4484 = vmatpush3.bf16.msra.mxu1 %v4883_v3  ;;  %2915 = vmatprep.mubr.bf16.mxu1 %v663_v17 }
  0xb2   : > { %4485 = vmatprep.subr.bf16.mxu1 %v4886_v6 }
  0xb3   : > { %4446 = vmatpush3.bf16.msra.mxu0 %v4885_v5  ;;  %v489_v5 = vld [vmem:[%s5191_s29 + $0x2f8] sm:$0xff] }
  0xb4   : > { %4447 = vmatprep.subr.bf16.mxu0 %v4888_v14  ;;  %v639_v17 = vpack.c.bf16 %v489_v5, %v464_v1 }
  0xb5   : > { %4486 = vmatpush3.bf16.msra.mxu1 %v4887_v10 }
  0xb6   : > { %2851 = vmatmul.mubr.bf16.gmra.mrb[72].mxu0 %v660_v13  ;;  %4487 = vmatprep.subr.bf16.mxu1 %v4890_v22  ;;  %v515_v13 = vld [vmem:[%s5191_s29 + $0x3c8] sm:$0xff] }
  0xb7   : > { %4448 = vmatpush3.bf16.msra.mxu0 %v4889_v18  ;;  %2858 = vmatprep.mubr.bf16.mxu0 %v686_v29  ;;  %v466_v18 = vld [vmem:[%s5191_s29 + $0x240] sm:$0xff]  ;;  %v665_v22 = vpack.c.bf16 %v540_v20, %v515_v13 }
  0xb8   : > { %2916 = vmatmul.mubr.bf16.gmra.mrb[72].mxu1 %v662_v21  ;;  %4449 = vmatprep.subr.bf16.mxu0 %v4892_v24  ;;  %v641_v27 = vpack.c.bf16 %v491_v19, %v466_v18  ;;  %v518_v19 = vld [vmem:[%s5191_s29 + $0x3e0] sm:$0xff] }
  0xb9   : > { %4488 = vmatpush3.bf16.msra.mxu1 %v4891_v23  ;;  %2923 = vmatprep.mubr.bf16.mxu1 %v688_v37  ;;  %v4906_v23 = vld [vmem:[%s6090_s1 + $0x610] sm:$0xff]  }
  0xba   : > { %4489 = vmatprep.subr.bf16.mxu1 %v4894_v26  ;;  %v542_v26 = vld [vmem:[%s5191_s29 + $0x4a0] sm:$0xff] }
  0xbb   : > { %4450 = vmatpush3.bf16.msra.mxu0 %v4893_v25  ;;  %v517_v25 = vld [vmem:[%s5191_s29 + $0x3d8] sm:$0xff] }
  0xbc   : > { %4451 = vmatprep.subr.bf16.mxu0 %v4896_v34  ;;  %v667_v29 = vpack.c.bf16 %v542_v26, %v517_v25  ;;  %v565_v34 = vld [vmem:[%s5191_s29 + $0x558] sm:$0xff] }
  0xbd   : > { %4490 = vmatpush3.bf16.msra.mxu1 %v4895_v30 }
  0xbe   : > { %2859 = vmatmul.mubr.bf16.gmra.mrb[76].mxu0 %v685_v33  ;;  %4491 = vmatprep.subr.bf16.mxu1 %v4898_v42 }
  0xbf   : > { %4452 = vmatpush3.bf16.msra.mxu0 %v4897_v38  ;;  %2964 = vmatprep.mubr.bf16.mxu0 %v615_v49 }
  0xc0   : > { %2924 = vmatmul.mubr.bf16.gmra.mrb[76].mxu1 %v687_v41  ;;  %4453 = vmatprep.subr.bf16.mxu0 %v4900_v44  ;;  %v541_v41 = vld [vmem:[%s5191_s29 + $0x498] sm:$0xff]  ;;  %v690_v44 = vpack.c.bf16 %v590_v35, %v565_v34 }
  0xc1   : > { %4492 = vmatpush3.bf16.msra.mxu1 %v4899_v43  ;;  %3029 = vmatprep.mubr.bf16.mxu1 %v617_v61  ;;  %v443_v61 = vld [vmem:[%s5191_s29 + $0x188] sm:$0xff] }
  0xc2   : > { %4493 = vmatprep.subr.bf16.mxu1 %v4902_v46  ;;  %v592_v46 = vld [vmem:[%s5191_s29 + $0x630] sm:$0xff] }
  0xc3   : > { %4454 = vmatpush3.bf16.msra.mxu0 %v4901_v45  ;;  %v567_v45 = vld [vmem:[%s5191_s29 + $0x568] sm:$0xff] }
  0xc4   : > { %4575 = vmatprep.subr.bf16.mxu0 %v4904_v54  ;;  %v692_v59 = vpack.c.bf16 %v592_v46, %v567_v45 }
  0xc5   : > { %4494 = vmatpush3.bf16.msra.mxu1 %v4903_v50 }
  0xc6   : > { %2965 = vmatmul.mubr.bf16.vlgmr.msra.gmra.mrb[80].mxu0 %v614_v53  ;;  %v666_v53 = vpack.c.bf16 %v541_v41, %v516_v40 }
  0xc7   : > { %4576 = vmatpush3.bf16.msra.mxu0 %v4904_v54  ;;  %2972 = vmatprep.mubr.bf16.mxu0 %v640_v4  ;;  %v564_v54 = vld [vmem:[%s5191_s29 + $0x550] sm:$0xff] }
  0xc8   : > { %3030 = vmatmul.mubr.bf16.vlgmr.msra.gmra.mrb[80].mxu1 %v616_v62  ;;  %4577 = vmatprep.subr.bf16.mxu0 %v4905_v7  ;;  %v689_v5 = vpack.c.bf16 %v589_v55, %v564_v54 }
  0xc9   : > { %3037 = vmatprep.mubr.bf16.mxu1 %v642_v12 }
  0xcb   : > { %4578 = vmatpush3.bf16.msra.mxu0 %v4905_v7 }
  0xcc   : > { %4579 = vmatprep.subr.bf16.mxu0 %v4906_v23 }
  0xce   : > { %2973 = vmatmul.mubr.bf16.gmra.mrb[84].mxu0 %v639_v17 }
  0xcf   : > { %2980 = vmatprep.mubr.bf16.mxu0 %v665_v22  ;;  %4580 = vmatpush3.bf16.msra.mxu0 %v4906_v23  ;;  %v543_v22 = vld [vmem:[%s5191_s29 + $0x4a8] sm:$0xff] }
  0xd0   : > { %3038 = vmatmul.mubr.bf16.gmra.mrb[84].mxu1 %v641_v27  ;;  %4581 = vmatprep.subr.bf16.mxu0 %v4907_v32 }
  0xd1   : > { %3045 = vmatprep.mubr.bf16.mxu1 %v667_v29  ;;  %v668_v29 = vpack.c.bf16 %v543_v22, %v518_v19 }
  0xd3   : > { %4582 = vmatpush3.bf16.msra.mxu0 %v4907_v32 }
  0xd6   : > { %2981 = vmatmul.mubr.bf16.gmra.mrb[88].mxu0 %v664_v39 }
  0xd7   : > { %2988 = vmatprep.mubr.bf16.mxu0 %v690_v44 }
  0xd8   : > { %3046 = vmatmul.mubr.bf16.gmra.mrb[88].mxu1 %v666_v53 }
  0xd9   : > { %3053 = vmatprep.mubr.bf16.mxu1 %v692_v59 }
  0xde   : > { %2989 = vmatmul.mubr.bf16.gmra.mrb[92].mxu0 %v689_v5 }
  0xf9   : > { %v4055_v56 = vpop.f32.mrb[0].mxu0 }
  0xfa   : > { %v4056_v60 = vpop.f32.mrb[1].mxu0 }
  0xfb   : > { %v4057_v2 = vadd.f32 %v4056_v60, %v4055_v56  ;;  %v4058_v3 = vpop.f32.mrb[2].mxu0  ;;  %v4095_v6 = vpop.f32.mrb[0].mxu1  ;;  %v418_v60 = vld [vmem:[%s5191_s29 + $0xc0] sm:$0xff] }
  0xfc   : > { %v4059_v10 = vpop.f32.mrb[3].mxu0  ;;  %v4096_v11 = vpop.f32.mrb[1].mxu1  ;;  %v618_v8 = vpack.c.bf16 %v443_v61, %v418_v60 }
  0xfd   : > { %v4060_v14 = vadd.f32 %v4059_v10, %v4058_v3  ;;  %v4097_v15 = vadd.f32 %v4096_v11, %v4095_v6  ;;  %v4098_v16 = vpop.f32.mrb[2].mxu1  ;;  %v2317_v49 = vadd.f32 %v4057_v2, %v5885_v47  ;;  %v566_v3 = vld [vmem:[%s5191_s29 + $0x560] sm:$0xff]  ;;  %v591_v6 = vld [vmem:[%s5191_s29 + $0x628] sm:$0xff] }
  0xfe   : > { %v4099_v21 = vpop.f32.mrb[3].mxu1  ;;  %v691_v13 = vpack.c.bf16 %v591_v6, %v566_v3  ;;  %4583 = vmatprep.mubr.msk.bf16.mxu0 %vm2269_vm0, %v618_v8 }
  0xff   : > { %v4100_v24 = vadd.f32 %v4099_v21, %v4098_v16  ;;  %v2320_v50 = vadd.f32 %v4060_v14, %v5885_v47  ;;  %v5895_v62 = vadd.f32 %v4097_v15, %v2317_v49  ;;  %v468_v14 = vld [vmem:[%s5191_s29 + $0x250] sm:$0xff]  ;;  %v493_v15 = vld [vmem:[%s5191_s29 + $0x318] sm:$0xff] }
 0x100   : > { %3054 = vmatmul.mubr.bf16.gmra.mrb[92].mxu1 %v691_v13  ;;  %v643_v27 = vpack.c.bf16 %v493_v15, %v468_v14 }
 0x101   : > { %v4061_v30 = vpop.f32.mrb[4].mxu0  ;;  %v5897_v63 = vadd.f32 %v4100_v24, %v2320_v50 }
 0x102   : > { %v4062_v33 = vpop.f32.mrb[5].mxu0  ;;  %4584 = vmatmul.mubr.msk.bf16.vlgmr.msra.gmra.mrb[96].mxu0 %vm2269_vm0, %v643_v27 }
 0x103   : > { %v4063_v36 = vadd.f32 %v4062_v33, %v4061_v30  ;;  %v4064_v37 = vpop.f32.mrb[6].mxu0  ;;  %v4101_v42 = vpop.f32.mrb[4].mxu1  ;;  %v593_v33 = vld [vmem:[%s5191_s29 + $0x638] sm:$0xff]  ;;  %4587 = vmatprep.mubr.msk.bf16.mxu0 %vm2269_vm0, %v668_v29 }
 0x104   : > { %v4065_v38 = vpop.f32.mrb[7].mxu0  ;;  %v4102_v48 = vpop.f32.mrb[5].mxu1 }
 0x105   : > { %v4066_v43 = vadd.f32 %v4065_v38, %v4064_v37  ;;  %v2325_v51 = vadd.f32 %v4063_v36, %v5885_v47  ;;  %v4104_v52 = vpop.f32.mrb[6].mxu1  ;;  %v4103_v57 = vadd.f32 %v4102_v48, %v4101_v42 }
 0x106   : > { %v4105_v58 = vpop.f32.mrb[7].mxu1 }
 0x107   : > { %v2328_v56 = vadd.f32 %v4066_v43, %v5885_v47  ;;  %v4106_v0 = vadd.f32 %v4105_v58, %v4104_v52  ;;  %v5899_v1 = vadd.f32 %v4103_v57, %v2325_v51  ;;  %v693_v43 = vpack.c.bf16 %v593_v33, %v568_v31 }
 0x109   : > { %v5901_v2 = vadd.f32 %v4106_v0, %v2328_v56  ;;  %v4067_v4 = vpop.f32.mrb[8].mxu0 }
 0x10a   : > { %v4068_v7 = vpop.f32.mrb[9].mxu0  ;;  %4588 = vmatmul.mubr.msk.bf16.gmra.mrb[100].mxu0 %vm2269_vm0, %v693_v43 }
 0x10b   : > { %v4069_v9 = vadd.f32 %v4068_v7, %v4067_v4  ;;  %v4070_v10 = vpop.f32.mrb[10].mxu0  ;;  %v4107_v11 = vpop.f32.mrb[8].mxu1 }
 0x10c   : > { %v4071_v12 = vpop.f32.mrb[11].mxu0  ;;  %v4108_v18 = vpop.f32.mrb[9].mxu1 }
 0x10d   : > { %v2333_v16 = vadd.f32 %v4069_v9, %v5885_v47  ;;  %v4072_v17 = vadd.f32 %v4071_v12, %v4070_v10  ;;  %v4109_v20 = vadd.f32 %v4108_v18, %v4107_v11  ;;  %v4110_v21 = vpop.f32.mrb[10].mxu1 }
 0x10e   : > { %v4111_v24 = vpop.f32.mrb[11].mxu1 }
 0x10f   : > { %v2336_v23 = vadd.f32 %v4072_v17, %v5885_v47  ;;  %v5912_v25 = vadd.f32 %v4109_v20, %v2333_v16  ;;  %v4112_v26 = vadd.f32 %v4111_v24, %v4110_v21 }
 0x111   : > { %v5914_v28 = vadd.f32 %v4112_v26, %v2336_v23  ;;  %v4073_v30 = vpop.f32.mrb[12].mxu0 }
 0x112   : > { %v4074_v32 = vpop.f32.mrb[13].mxu0 }
 0x113   : > { %v4075_v34 = vadd.f32 %v4074_v32, %v4073_v30  ;;  %v4076_v35 = vpop.f32.mrb[14].mxu0  ;;  %v4113_v36 = vpop.f32.mrb[12].mxu1 }
 0x114   : > { %v4077_v37 = vpop.f32.mrb[15].mxu0  ;;  %v4114_v40 = vpop.f32.mrb[13].mxu1 }
 0x115   : > { %v2341_v38 = vadd.f32 %v4075_v34, %v5885_v47  ;;  %v4078_v39 = vadd.f32 %v4077_v37, %v4076_v35  ;;  %v4115_v41 = vadd.f32 %v4114_v40, %v4113_v36  ;;  %v4116_v42 = vpop.f32.mrb[14].mxu1 }
 0x116   : > { %v4117_v45 = vpop.f32.mrb[15].mxu1 }
 0x117   : > { %v2344_v44 = vadd.f32 %v4078_v39, %v5885_v47  ;;  %v2406_v46 = vadd.f32 %v4115_v41, %v2341_v38  ;;  %v4118_v48 = vadd.f32 %v4117_v45, %v4116_v42 }
 0x119   : > { %v2409_v49 = vadd.f32 %v4118_v48, %v2344_v44  ;;  %v4135_v50 = vpop.f32.mrb[16].mxu0 }
 0x11a   : > { %v4136_v51 = vpop.f32.mrb[17].mxu0 }
 0x11b   : > { %v4137_v52 = vadd.f32 %v4136_v51, %v4135_v50  ;;  %v4138_v53 = vpop.f32.mrb[18].mxu0  ;;  %v4175_v56 = vpop.f32.mrb[16].mxu1 }
 0x11c   : > { %v4139_v54 = vpop.f32.mrb[19].mxu0  ;;  %v4176_v58 = vpop.f32.mrb[17].mxu1 }
 0x11d   : > { %v2447_v55 = vadd.f32 %v4137_v52, %v5895_v62  ;;  %v4140_v57 = vadd.f32 %v4139_v54, %v4138_v53  ;;  %v4177_v60 = vadd.f32 %v4176_v58, %v4175_v56  ;;  %v4178_v47 = vpop.f32.mrb[18].mxu1 }
 0x11e   : > { %v4179_v61 = vpop.f32.mrb[19].mxu1 }
 0x11f   : > { %v2450_v59 = vadd.f32 %v4140_v57, %v5897_v63  ;;  %v2512_v0 = vadd.f32 %v4177_v60, %v2447_v55  ;;  %v4180_v3 = vadd.f32 %v4179_v61, %v4178_v47 }
 0x121   : > { %v2515_v4 = vadd.f32 %v4180_v3, %v2450_v59  ;;  %v4141_v5 = vpop.f32.mrb[20].mxu0 }
 0x122   : > { %v4142_v6 = vpop.f32.mrb[21].mxu0 }
 0x123   : > { %v4143_v7 = vadd.f32 %v4142_v6, %v4141_v5  ;;  %v4144_v8 = vpop.f32.mrb[22].mxu0  ;;  %v4181_v9 = vpop.f32.mrb[20].mxu1 }
 0x124   : > { %v4145_v10 = vpop.f32.mrb[23].mxu0  ;;  %v4182_v12 = vpop.f32.mrb[21].mxu1 }
 0x125   : > { %v2455_v11 = vadd.f32 %v4143_v7, %v5899_v1  ;;  %v4146_v62 = vadd.f32 %v4145_v10, %v4144_v8  ;;  %v4183_v13 = vadd.f32 %v4182_v12, %v4181_v9  ;;  %v4184_v14 = vpop.f32.mrb[22].mxu1 }
 0x126   : > { %v4185_v15 = vpop.f32.mrb[23].mxu1 }
 0x127   : > { %v2458_v63 = vadd.f32 %v4146_v62, %v5901_v2  ;;  %v2520_v16 = vadd.f32 %v4183_v13, %v2455_v11  ;;  %v4186_v17 = vadd.f32 %v4185_v15, %v4184_v14 }
 0x129   : > { %v2523_v18 = vadd.f32 %v4186_v17, %v2458_v63  ;;  %v4147_v19 = vpop.f32.mrb[24].mxu0 }
 0x12a   : > { %v4148_v20 = vpop.f32.mrb[25].mxu0 }
 0x12b   : > { %v4149_v21 = vadd.f32 %v4148_v20, %v4147_v19  ;;  %v4150_v22 = vpop.f32.mrb[26].mxu0  ;;  %v4187_v23 = vpop.f32.mrb[24].mxu1  ;;  %v4908_v20 = vld [vmem:[%s6092_s3] sm:$0xff]  }
 0x12c   : > { %v4151_v24 = vpop.f32.mrb[27].mxu0  ;;  %v4188_v1 = vpop.f32.mrb[25].mxu1  ;;  %4591 = vmatprep.subr.bf16.mxu1 %v4908_v20 }
 0x12d   : > { %v2463_v26 = vadd.f32 %v4149_v21, %v5912_v25  ;;  %v4152_v27 = vadd.f32 %v4151_v24, %v4150_v22  ;;  %v4189_v29 = vadd.f32 %v4188_v1, %v4187_v23  ;;  %v4190_v30 = vpop.f32.mrb[26].mxu1  ;;  %4592 = vmatpush3.bf16.msra.mxu1 %v4908_v20 }
 0x12e   : > { %v4191_v32 = vpop.f32.mrb[27].mxu1 }
 0x12f   : > { %v2466_v31 = vadd.f32 %v4152_v27, %v5914_v28  ;;  %v2528_v2 = vadd.f32 %v4189_v29, %v2463_v26  ;;  %v4192_v33 = vadd.f32 %v4191_v32, %v4190_v30 }
 0x131   : > { %v5929_v34 = vadd.f32 %v4192_v33, %v2466_v31  ;;  %v4153_v35 = vpop.f32.mrb[28].mxu0 }
 0x132   : > { %v4154_v36 = vpop.f32.mrb[29].mxu0 }
 0x133   : > { %v4155_v37 = vadd.f32 %v4154_v36, %v4153_v35  ;;  %v4156_v38 = vpop.f32.mrb[30].mxu0  ;;  %v4193_v41 = vpop.f32.mrb[28].mxu1  ;;  %v4910_v35 = vld [vmem:[%s6092_s3 + $0x10] sm:$0xff]  }
 0x134   : > { %v4157_v39 = vpop.f32.mrb[31].mxu0  ;;  %v4194_v25 = vpop.f32.mrb[29].mxu1 }
 0x135   : > { %v2471_v40 = vadd.f32 %v4155_v37, %v2406_v46  ;;  %v4158_v42 = vadd.f32 %v4157_v39, %v4156_v38  ;;  %v4195_v44 = vadd.f32 %v4194_v25, %v4193_v41  ;;  %v4196_v45 = vpop.f32.mrb[30].mxu1  ;;  %v4911_v39 = vld [vmem:[%s6092_s3 + $0x18] sm:$0xff]  }
 0x136   : > { %v4197_v48 = vpop.f32.mrb[31].mxu1 }
 0x137   : > { %v2474_v43 = vadd.f32 %v4158_v42, %v2409_v49  ;;  %v5931_v50 = vadd.f32 %v4195_v44, %v2471_v40  ;;  %v4198_v28 = vadd.f32 %v4197_v48, %v4196_v45  ;;  %v4912_v44 = vld [vmem:[%s6092_s3 + $0x20] sm:$0xff]  }
 0x139   : > { %v5933_v51 = vadd.f32 %v4198_v28, %v2474_v43  ;;  %v4215_v52 = vpop.f32.mrb[32].mxu0 }
 0x13a   : > { %v4216_v53 = vpop.f32.mrb[33].mxu0 }
 0x13b   : > { %v4217_v54 = vadd.f32 %v4216_v53, %v4215_v52  ;;  %v4218_v55 = vpop.f32.mrb[34].mxu0  ;;  %v4255_v56 = vpop.f32.mrb[32].mxu1 }
 0x13c   : > { %v4219_v57 = vpop.f32.mrb[35].mxu0  ;;  %v4256_v59 = vpop.f32.mrb[33].mxu1 }
 0x13d   : > { %v2577_v58 = vadd.f32 %v4217_v54, %v2512_v0  ;;  %v4220_v46 = vadd.f32 %v4219_v57, %v4218_v55  ;;  %v4257_v60 = vadd.f32 %v4256_v59, %v4255_v56  ;;  %v4258_v47 = vpop.f32.mrb[34].mxu1  ;;  %v4914_v59 = vld [vmem:[%s6092_s3 + $0x30] sm:$0xff]  }
 0x13e   : > { %v4259_v61 = vpop.f32.mrb[35].mxu1 }
 0x13f   : > { %v2580_v49 = vadd.f32 %v4220_v46, %v2515_v4  ;;  %v5935_v3 = vadd.f32 %v4257_v60, %v2577_v58  ;;  %v4260_v5 = vadd.f32 %v4259_v61, %v4258_v47  ;;  %v4913_v58 = vld [vmem:[%s6092_s3 + $0x28] sm:$0xff]  }
 0x141   : > { %v5937_v6 = vadd.f32 %v4260_v5, %v2580_v49  ;;  %v4221_v7 = vpop.f32.mrb[36].mxu0  ;;  %v4915_v5 = vld [vmem:[%s6092_s3 + $0x38] sm:$0xff]  }
 0x142   : > { %v4222_v8 = vpop.f32.mrb[37].mxu0 }
 0x143   : > { %v4223_v9 = vadd.f32 %v4222_v8, %v4221_v7  ;;  %v4224_v10 = vpop.f32.mrb[38].mxu0  ;;  %v4261_v11 = vpop.f32.mrb[36].mxu1 }
 0x144   : > { %v4225_v62 = vpop.f32.mrb[39].mxu0  ;;  %v4262_v0 = vpop.f32.mrb[37].mxu1 }
 0x145   : > { %v2585_v12 = vadd.f32 %v4223_v9, %v2520_v16  ;;  %v4226_v13 = vadd.f32 %v4225_v62, %v4224_v10  ;;  %v4263_v14 = vadd.f32 %v4262_v0, %v4261_v11  ;;  %v4264_v63 = vpop.f32.mrb[38].mxu1 }
 0x146   : > { %v4265_v17 = vpop.f32.mrb[39].mxu1 }
 0x147   : > { %v2588_v15 = vadd.f32 %v4226_v13, %v2523_v18  ;;  %v5939_v4 = vadd.f32 %v4263_v14, %v2585_v12  ;;  %v4266_v19 = vadd.f32 %v4265_v17, %v4264_v63  ;;  %v4909_v18 = vld [vmem:[%s6092_s3 + $0x8] sm:$0xff]  }
 0x148   : > { %4593 = vmatprep.subr.bf16.mxu1 %v4909_v18 }
 0x149   : > { %v5944_v21 = vadd.f32 %v4266_v19, %v2588_v15  ;;  %v4227_v22 = vpop.f32.mrb[40].mxu0  ;;  %4594 = vmatpush3.bf16.msra.mxu1 %v4909_v18 }
 0x14a   : > { %v4228_v23 = vpop.f32.mrb[41].mxu0  ;;  %4595 = vmatprep.subr.bf16.mxu1 %v4910_v35 }
 0x14b   : > { %v4229_v16 = vadd.f32 %v4228_v23, %v4227_v22  ;;  %v4230_v24 = vpop.f32.mrb[42].mxu0  ;;  %v4267_v1 = vpop.f32.mrb[40].mxu1 }
 0x14c   : > { %v4231_v26 = vpop.f32.mrb[43].mxu0  ;;  %v4268_v30 = vpop.f32.mrb[41].mxu1 }
 0x14d   : > { %v2593_v27 = vadd.f32 %v4229_v16, %v2528_v2  ;;  %v4232_v29 = vadd.f32 %v4231_v26, %v4230_v24  ;;  %v4269_v32 = vadd.f32 %v4268_v30, %v4267_v1  ;;  %v4270_v33 = vpop.f32.mrb[42].mxu1  ;;  %4596 = vmatpush3.bf16.msra.mxu1 %v4910_v35  ;;  %v4917_v1 = vld [vmem:[%s6094_s5 + $0x8] sm:$0xff]  }
 0x14e   : > { %v4271_v36 = vpop.f32.mrb[43].mxu1  ;;  %4597 = vmatprep.subr.bf16.mxu1 %v4911_v39 }
 0x14f   : > { %v2596_v31 = vadd.f32 %v4232_v29, %v5929_v34  ;;  %v5953_v37 = vadd.f32 %v4269_v32, %v2593_v27  ;;  %v4272_v38 = vadd.f32 %v4271_v36, %v4270_v33  ;;  %v4916_v27 = vld [vmem:[%s6094_s5] sm:$0xff]  }
 0x150   : > { %4615 = vmatprep.subr.bf16.mxu0 %v4916_v27 }
 0x151   : > { %v5955_v2 = vadd.f32 %v4272_v38, %v2596_v31  ;;  %v4233_v40 = vpop.f32.mrb[44].mxu0  ;;  %4598 = vmatpush3.bf16.msra.mxu1 %v4911_v39  ;;  %4616 = vmatpush3.bf16.msra.mxu0 %v4916_v27 }
 0x152   : > { %v4234_v34 = vpop.f32.mrb[45].mxu0  ;;  %4599 = vmatprep.subr.bf16.mxu1 %v4912_v44  ;;  %4617 = vmatprep.subr.bf16.mxu0 %v4917_v1 }
 0x153   : > { %v4235_v41 = vadd.f32 %v4234_v34, %v4233_v40  ;;  %v4236_v42 = vpop.f32.mrb[46].mxu0  ;;  %v4273_v25 = vpop.f32.mrb[44].mxu1 }
 0x154   : > { %v4237_v43 = vpop.f32.mrb[47].mxu0  ;;  %v4274_v28 = vpop.f32.mrb[45].mxu1 }
 0x155   : > { %v2601_v45 = vadd.f32 %v4235_v41, %v5931_v50  ;;  %v4238_v48 = vadd.f32 %v4237_v43, %v4236_v42  ;;  %v4275_v52 = vadd.f32 %v4274_v28, %v4273_v25  ;;  %v4276_v53 = vpop.f32.mrb[46].mxu1  ;;  %4600 = vmatpush3.bf16.msra.mxu1 %v4912_v44  ;;  %4618 = vmatpush3.bf16.msra.mxu0 %v4917_v1 }
 0x156   : > { %v4277_v55 = vpop.f32.mrb[47].mxu1  ;;  %4601 = vmatprep.subr.bf16.mxu1 %v4913_v58 }
 0x157   : > { %v2604_v54 = vadd.f32 %v4238_v48, %v5933_v51  ;;  %v5965_v56 = vadd.f32 %v4275_v52, %v2601_v45  ;;  %v4278_v57 = vadd.f32 %v4277_v55, %v4276_v53 }
 0x159   : > { %v5970_v46 = vadd.f32 %v4278_v57, %v2604_v54  ;;  %4602 = vmatpush3.bf16.msra.mxu1 %v4913_v58  ;;  %v4295_v50 = vpop.f32.mrb[48].mxu0 }
 0x15a   : > { %v4296_v60 = vpop.f32.mrb[49].mxu0  ;;  %4603 = vmatprep.subr.bf16.mxu1 %v4914_v59 }
 0x15b   : > { %v4297_v51 = vadd.f32 %v4296_v60, %v4295_v50  ;;  %v4298_v47 = vpop.f32.mrb[50].mxu0  ;;  %v4335_v49 = vpop.f32.mrb[48].mxu1 }
 0x15c   : > { %v4299_v61 = vpop.f32.mrb[51].mxu0  ;;  %v4336_v9 = vpop.f32.mrb[49].mxu1 }
 0x15d   : > { %4604 = vmatpush3.bf16.msra.mxu1 %v4914_v59  ;;  %v2707_v7 = vadd.f32 %v4297_v51, %v5935_v3  ;;  %v4300_v8 = vadd.f32 %v4299_v61, %v4298_v47  ;;  %v4337_v10 = vadd.f32 %v4336_v9, %v4335_v49  ;;  %v4338_v11 = vpop.f32.mrb[50].mxu1 }
 0x15e   : > { %4605 = vmatprep.subr.bf16.mxu1 %v4915_v5  ;;  %v4339_v12 = vpop.f32.mrb[51].mxu1 }
 0x15f   : > { %v2710_v62 = vadd.f32 %v4300_v8, %v5937_v6  ;;  %v5980_v13 = vadd.f32 %v4337_v10, %v2707_v7  ;;  %v4340_v0 = vadd.f32 %v4339_v12, %v4338_v11 }
 0x161   : > { %4606 = vmatpush3.bf16.msra.mxu1 %v4915_v5  ;;  %v5982_v14 = vadd.f32 %v4340_v0, %v2710_v62  ;;  %v4301_v63 = vpop.f32.mrb[52].mxu0 }
 0x162   : > { %v4302_v15 = vpop.f32.mrb[53].mxu0 }
 0x163   : > { %v4303_v17 = vadd.f32 %v4302_v15, %v4301_v63  ;;  %v4304_v19 = vpop.f32.mrb[54].mxu0  ;;  %v4341_v22 = vpop.f32.mrb[52].mxu1 }
 0x164   : > { %v4305_v20 = vpop.f32.mrb[55].mxu0  ;;  %v4342_v16 = vpop.f32.mrb[53].mxu1 }
 0x165   : > { %v2715_v3 = vadd.f32 %v4303_v17, %v5939_v4  ;;  %v4306_v23 = vadd.f32 %v4305_v20, %v4304_v19  ;;  %v4343_v6 = vadd.f32 %v4342_v16, %v4341_v22  ;;  %v4344_v18 = vpop.f32.mrb[54].mxu1 }
 0x166   : > { %v4345_v26 = vpop.f32.mrb[55].mxu1 }
 0x167   : > { %v2718_v24 = vadd.f32 %v4306_v23, %v5944_v21  ;;  %v5992_v29 = vadd.f32 %v4343_v6, %v2715_v3  ;;  %v4346_v30 = vadd.f32 %v4345_v26, %v4344_v18  ;;  %v4918_v21 = vld [vmem:[%s6094_s5 + $0x10] sm:$0xff]  }
 0x168   : > { %4619 = vmatprep.subr.bf16.mxu0 %v4918_v21 }
 0x169   : > { %v5994_v4 = vadd.f32 %v4346_v30, %v2718_v24  ;;  %v4307_v31 = vpop.f32.mrb[56].mxu0  ;;  %4620 = vmatpush3.bf16.msra.mxu0 %v4918_v21 }
 0x16a   : > { %v4308_v32 = vpop.f32.mrb[57].mxu0 }
 0x16b   : > { %v4309_v33 = vadd.f32 %v4308_v32, %v4307_v31  ;;  %v4310_v35 = vpop.f32.mrb[58].mxu0  ;;  %v4347_v36 = vpop.f32.mrb[56].mxu1 }
 0x16c   : > { %v4311_v38 = vpop.f32.mrb[59].mxu0  ;;  %v4348_v34 = vpop.f32.mrb[57].mxu1 }
 0x16d   : > { %v2723_v39 = vadd.f32 %v4309_v33, %v5953_v37  ;;  %v4312_v40 = vadd.f32 %v4311_v38, %v4310_v35  ;;  %v4349_v41 = vadd.f32 %v4348_v34, %v4347_v36  ;;  %v4350_v42 = vpop.f32.mrb[58].mxu1 }
 0x16e   : > { %v4351_v43 = vpop.f32.mrb[59].mxu1 }
 0x16f   : > { %v2726_v25 = vadd.f32 %v4312_v40, %v5955_v2  ;;  %v2788_v44 = vadd.f32 %v4349_v41, %v2723_v39  ;;  %v4352_v45 = vadd.f32 %v4351_v43, %v4350_v42 }
 0x171   : > { %v2791_v48 = vadd.f32 %v4352_v45, %v2726_v25  ;;  %v4313_v28 = vpop.f32.mrb[60].mxu0 }
 0x172   : > { %v4314_v52 = vpop.f32.mrb[61].mxu0 }
 0x173   : > { %v4315_v53 = vadd.f32 %v4314_v52, %v4313_v28  ;;  %v4316_v54 = vpop.f32.mrb[62].mxu0  ;;  %v4353_v55 = vpop.f32.mrb[60].mxu1 }
 0x174   : > { %v4317_v57 = vpop.f32.mrb[63].mxu0  ;;  %v4354_v50 = vpop.f32.mrb[61].mxu1 }
 0x175   : > { %v2731_v37 = vadd.f32 %v4315_v53, %v5965_v56  ;;  %v4318_v58 = vadd.f32 %v4317_v57, %v4316_v54  ;;  %v4355_v59 = vadd.f32 %v4354_v50, %v4353_v55  ;;  %v4356_v60 = vpop.f32.mrb[62].mxu1 }
 0x176   : > { %v4357_v2 = vpop.f32.mrb[63].mxu1 }
 0x177   : > { %v2734_v51 = vadd.f32 %v4318_v58, %v5970_v46  ;;  %v2796_v47 = vadd.f32 %v4355_v59, %v2731_v37  ;;  %v4358_v49 = vadd.f32 %v4357_v2, %v4356_v60 }
 0x179   : > { %v2799_v61 = vadd.f32 %v4358_v49, %v2734_v51  ;;  %v4375_v5 = vpop.f32.mrb[64].mxu0 }
 0x17a   : > { %v4376_v7 = vpop.f32.mrb[65].mxu0 }
 0x17b   : > { %v4377_v8 = vadd.f32 %v4376_v7, %v4375_v5  ;;  %v4378_v9 = vpop.f32.mrb[66].mxu0  ;;  %v4415_v62 = vpop.f32.mrb[64].mxu1 }
 0x17c   : > { %v4379_v10 = vpop.f32.mrb[67].mxu0  ;;  %v4416_v56 = vpop.f32.mrb[65].mxu1 }
 0x17d   : > { %v2837_v11 = vadd.f32 %v4377_v8, %v5980_v13  ;;  %v4380_v12 = vadd.f32 %v4379_v10, %v4378_v9  ;;  %v4417_v63 = vadd.f32 %v4416_v56, %v4415_v62  ;;  %v4418_v15 = vpop.f32.mrb[66].mxu1 }
 0x17e   : > { %v4419_v17 = vpop.f32.mrb[67].mxu1 }
 0x17f   : > { %v2840_v0 = vadd.f32 %v4380_v12, %v5982_v14  ;;  %v2902_v46 = vadd.f32 %v4417_v63, %v2837_v11  ;;  %v4420_v19 = vadd.f32 %v4419_v17, %v4418_v15 }
 0x181   : > { %v2905_v20 = vadd.f32 %v4420_v19, %v2840_v0  ;;  %v4381_v3 = vpop.f32.mrb[68].mxu0 }
 0x182   : > { %v4382_v22 = vpop.f32.mrb[69].mxu0 }
 0x183   : > { %v4383_v23 = vadd.f32 %v4382_v22, %v4381_v3  ;;  %v4384_v16 = vpop.f32.mrb[70].mxu0  ;;  %v4421_v24 = vpop.f32.mrb[68].mxu1 }
 0x184   : > { %v4385_v6 = vpop.f32.mrb[71].mxu0  ;;  %v4422_v26 = vpop.f32.mrb[69].mxu1 }
 0x185   : > { %v2845_v18 = vadd.f32 %v4383_v23, %v5992_v29  ;;  %v4386_v13 = vadd.f32 %v4385_v6, %v4384_v16  ;;  %v4423_v27 = vadd.f32 %v4422_v26, %v4421_v24  ;;  %v4424_v1 = vpop.f32.mrb[70].mxu1 }
 0x186   : > { %v4425_v30 = vpop.f32.mrb[71].mxu1 }
 0x187   : > { %v2848_v14 = vadd.f32 %v4386_v13, %v5994_v4  ;;  %v2910_v31 = vadd.f32 %v4423_v27, %v2845_v18  ;;  %v4426_v21 = vadd.f32 %v4425_v30, %v4424_v1 }
 0x189   : > { %v2913_v32 = vadd.f32 %v4426_v21, %v2848_v14  ;;  %v4387_v33 = vpop.f32.mrb[72].mxu0 }
 0x18a   : > { %v4388_v35 = vpop.f32.mrb[73].mxu0 }
 0x18b   : > { %v4389_v36 = vadd.f32 %v4388_v35, %v4387_v33  ;;  %v4390_v38 = vpop.f32.mrb[74].mxu0  ;;  %v4427_v39 = vpop.f32.mrb[72].mxu1 }
 0x18c   : > { %v4391_v40 = vpop.f32.mrb[75].mxu0  ;;  %v4428_v42 = vpop.f32.mrb[73].mxu1 }
 0x18d   : > { %v2853_v34 = vadd.f32 %v4389_v36, %v2788_v44  ;;  %v4392_v41 = vadd.f32 %v4391_v40, %v4390_v38  ;;  %v4429_v29 = vadd.f32 %v4428_v42, %v4427_v39  ;;  %v4430_v25 = vpop.f32.mrb[74].mxu1 }
 0x18e   : > { %v4431_v45 = vpop.f32.mrb[75].mxu1 }
 0x18f   : > { %v2856_v43 = vadd.f32 %v4392_v41, %v2791_v48  ;;  %v2918_v28 = vadd.f32 %v4429_v29, %v2853_v34  ;;  %v4432_v52 = vadd.f32 %v4431_v45, %v4430_v25 }
 0x191   : > { %v2921_v4 = vadd.f32 %v4432_v52, %v2856_v43  ;;  %v4393_v53 = vpop.f32.mrb[76].mxu0 }
 0x192   : > { %v4394_v54 = vpop.f32.mrb[77].mxu0 }
 0x193   : > { %v4395_v55 = vadd.f32 %v4394_v54, %v4393_v53  ;;  %v4396_v57 = vpop.f32.mrb[78].mxu0  ;;  %v4433_v50 = vpop.f32.mrb[76].mxu1 }
 0x194   : > { %v4397_v37 = vpop.f32.mrb[79].mxu0  ;;  %v4434_v60 = vpop.f32.mrb[77].mxu1 }
 0x195   : > { %v2861_v58 = vadd.f32 %v4395_v55, %v2796_v47  ;;  %v4398_v59 = vadd.f32 %v4397_v37, %v4396_v57  ;;  %v4435_v44 = vadd.f32 %v4434_v60, %v4433_v50  ;;  %v4436_v2 = vpop.f32.mrb[78].mxu1 }
 0x196   : > { %v4437_v49 = vpop.f32.mrb[79].mxu1 }
 0x197   : > { %v2864_v51 = vadd.f32 %v4398_v59, %v2799_v61  ;;  %v2926_v5 = vadd.f32 %v4435_v44, %v2861_v58  ;;  %v4438_v7 = vadd.f32 %v4437_v49, %v4436_v2 }
 0x199   : > { %v2929_v48 = vadd.f32 %v4438_v7, %v2864_v51  ;;  %v4455_v8 = vpop.f32.mrb[80].mxu0 }
 0x19a   : > { %v4456_v9 = vpop.f32.mrb[81].mxu0 }
 0x19b   : > { %v4457_v10 = vadd.f32 %v4456_v9, %v4455_v8  ;;  %v4458_v11 = vpop.f32.mrb[82].mxu0  ;;  %v4495_v62 = vpop.f32.mrb[80].mxu1 }
 0x19c   : > { %v4459_v12 = vpop.f32.mrb[83].mxu0  ;;  %v4496_v63 = vpop.f32.mrb[81].mxu1 }
 0x19d   : > { %v2967_v56 = vadd.f32 %v4457_v10, %v2902_v46  ;;  %v4460_v0 = vadd.f32 %v4459_v12, %v4458_v11  ;;  %v4497_v47 = vadd.f32 %v4496_v63, %v4495_v62  ;;  %v4498_v15 = vpop.f32.mrb[82].mxu1 }
 0x19e   : > { %v4499_v19 = vpop.f32.mrb[83].mxu1 }
 0x19f   : > { %v2970_v17 = vadd.f32 %v4460_v0, %v2905_v20  ;;  %v4500_v61 = vadd.f32 %v4499_v19, %v4498_v15  ;;  %v3032_v3 = vadd.f32 %v4497_v47, %v2967_v56 }
 0x1a1   : > { %v4461_v22 = vpop.f32.mrb[84].mxu0  ;;  %v3035_v16 = vadd.f32 %v4500_v61, %v2970_v17 }
 0x1a2   : > { %v4462_v23 = vpop.f32.mrb[85].mxu0 }
 0x1a3   : > { %v4463_v24 = vadd.f32 %v4462_v23, %v4461_v22  ;;  %v4464_v6 = vpop.f32.mrb[86].mxu0  ;;  %v4501_v18 = vpop.f32.mrb[84].mxu1 }
 0x1a4   : > { %v4465_v13 = vpop.f32.mrb[87].mxu0  ;;  %v4502_v1 = vpop.f32.mrb[85].mxu1 }
 0x1a5   : > { %v2975_v26 = vadd.f32 %v4463_v24, %v2910_v31  ;;  %v4466_v27 = vadd.f32 %v4465_v13, %v4464_v6  ;;  %v4503_v14 = vadd.f32 %v4502_v1, %v4501_v18  ;;  %v4504_v46 = vpop.f32.mrb[86].mxu1 }
 0x1a6   : > { %v4505_v21 = vpop.f32.mrb[87].mxu1 }
 0x1a7   : > { %v2978_v30 = vadd.f32 %v4466_v27, %v2913_v32  ;;  %v4506_v33 = vadd.f32 %v4505_v21, %v4504_v46  ;;  %v3040_v35 = vadd.f32 %v4503_v14, %v2975_v26  ;;  %v4919_v21 = vld [vmem:[%s6094_s5 + $0x18] sm:$0xff]  }
 0x1a8   : > { %4621 = vmatprep.subr.bf16.mxu0 %v4919_v21 }
 0x1a9   : > { %v4467_v20 = vpop.f32.mrb[88].mxu0  ;;  %v3043_v38 = vadd.f32 %v4506_v33, %v2978_v30  ;;  %4622 = vmatpush3.bf16.msra.mxu0 %v4919_v21  ;;  %v4920_v33 = vld [vmem:[%s6094_s5 + $0x20] sm:$0xff]  }
 0x1aa   : > { %v4468_v36 = vpop.f32.mrb[89].mxu0  ;;  %4623 = vmatprep.subr.bf16.mxu0 %v4920_v33 }
 0x1ab   : > { %v4469_v39 = vadd.f32 %v4468_v36, %v4467_v20  ;;  %v4470_v40 = vpop.f32.mrb[90].mxu0  ;;  %v4507_v34 = vpop.f32.mrb[88].mxu1  ;;  %v4922_v20 = vld [vmem:[%s6094_s5 + $0x30] sm:$0xff]   ;;  %v4923_v36 = vld [vmem:[%s6094_s5 + $0x38] sm:$0xff]  }
 0x1ac   : > { %v4471_v41 = vpop.f32.mrb[91].mxu0  ;;  %v4508_v25 = vpop.f32.mrb[89].mxu1 }
 0x1ad   : > { %v2983_v42 = vadd.f32 %v4469_v39, %v2918_v28  ;;  %v4472_v29 = vadd.f32 %v4471_v41, %v4470_v40  ;;  %v4509_v43 = vadd.f32 %v4508_v25, %v4507_v34  ;;  %v4510_v31 = vpop.f32.mrb[90].mxu1  ;;  %4624 = vmatpush3.bf16.msra.mxu0 %v4920_v33  ;;  %v4925_v39 = vld [vmem:[%s6096_s7 + $0x8] sm:$0xff]   ;;  %v4926_v40 = vld [vmem:[%s6096_s7 + $0x10] sm:$0xff]   ;;  %v4001_v34 = vld [vmem:[%s6093_s4] ss:$0 sm:$0xff] }
 0x1ae   : > { %v4511_v52 = vpop.f32.mrb[91].mxu1 }
 0x1af   : > { %v2986_v45 = vadd.f32 %v4472_v29, %v2921_v4  ;;  %v4512_v53 = vadd.f32 %v4511_v52, %v4510_v31  ;;  %v3048_v54 = vadd.f32 %v4509_v43, %v2983_v42 }
 0x1b1   : > { %v4473_v32 = vpop.f32.mrb[92].mxu0  ;;  %v3051_v57 = vadd.f32 %v4512_v53, %v2986_v45 }
 0x1b2   : > { %v4474_v55 = vpop.f32.mrb[93].mxu0 }
 0x1b3   : > { %v4475_v37 = vadd.f32 %v4474_v55, %v4473_v32  ;;  %v4476_v58 = vpop.f32.mrb[94].mxu0 }
 0x1b4   : > { %v4477_v59 = vpop.f32.mrb[95].mxu0 }
 0x1b5   : > { %v2991_v60 = vadd.f32 %v4475_v37, %v2926_v5  ;;  %v4478_v51 = vadd.f32 %v4477_v59, %v4476_v58 }
 0x1b7   : > { %v2994_v49 = vadd.f32 %v4478_v51, %v2929_v48 }
 0x1d3   : > { %v4513_v50 = vpop.f32.mrb[92].mxu1 }
 0x1d4   : > { %v4514_v44 = vpop.f32.mrb[93].mxu1 }
 0x1d5   : > { %v4515_v2 = vadd.f32 %v4514_v44, %v4513_v50  ;;  %v4516_v28 = vpop.f32.mrb[94].mxu1  ;;  %v4585_v4 = vpop.f32.mrb[96].mxu0 }
 0x1d6   : > { %v4517_v7 = vpop.f32.mrb[95].mxu1  ;;  %v3105_v10 = vadd.f32 %v4585_v4, %v3040_v35  ;;  %v3096_v11 = vpop.f32.mrb[97].mxu0  ;;  %v4921_v35 = vld [vmem:[%s6094_s5 + $0x28] sm:$0xff]  }
 0x1d7   : > { %v4518_v8 = vadd.f32 %v4517_v7, %v4516_v28  ;;  %v3056_v9 = vadd.f32 %v4515_v2, %v2991_v60  ;;  %v3097_v12 = vadd.f32 %v3096_v11, %v3032_v3  ;;  %v4586_v56 = vpop.f32.mrb[98].mxu0  ;;  %4625 = vmatprep.subr.bf16.mxu0 %v4921_v35  ;;  %v4927_v11 = vld [vmem:[%s6096_s7 + $0x18] sm:$0xff]  }
 0x1d8   : > { %4940 = vtanh.f32 %v3105_v10  ;;  %v3108_v0 = vadd.f32 %v4586_v56, %v3043_v38  ;;  %v3099_v63 = vpop.f32.mrb[99].mxu0  ;;  %4626 = vmatpush3.bf16.msra.mxu0 %v4921_v35  ;;  %v4924_v38 = vld [vmem:[%s6096_s7] sm:$0xff]   ;;  %v4930_v56 = vld [vmem:[%s6096_s7 + $0x30] sm:$0xff]  }
 0x1d9   : > { %v3059_v62 = vadd.f32 %v4518_v8, %v2994_v49  ;;  %4942 = vtanh.f32 %v3097_v12  ;;  %v3100_v47 = vadd.f32 %v3099_v63, %v3035_v16  ;;  %4627 = vmatprep.subr.bf16.mxu0 %v4922_v20  ;;  %4639 = vmatprep.subr.bf16.mxu1 %v4924_v38  ;;  %v4929_v12 = vld [vmem:[%s6096_s7 + $0x28] sm:$0xff]   ;;  %v4932_v63 = vld [vmem:[%s6098_s9] sm:$0xff]  }
 0x1da   : > { %4944 = vtanh.f32 %v3108_v0  ;;  %v4931_v0 = vld [vmem:[%s6096_s7 + $0x38] sm:$0xff]  }
 0x1db   : > { %4946 = vtanh.f32 %v3100_v47  ;;  %v4933_v47 = vld [vmem:[%s6098_s9 + $0x8] sm:$0xff]  }
 0x1dc   : > { %4628 = vmatpush3.bf16.msra.mxu0 %v4922_v20 }
 0x1dd   : > { %v4589_v5 = vpop.f32.mrb[100].mxu0  ;;  %4629 = vmatprep.subr.bf16.mxu0 %v4923_v36 }
 0x1de   : > { %v3121_v15 = vadd.f32 %v4589_v5, %v3056_v9  ;;  %v3112_v17 = vpop.f32.mrb[101].mxu0  ;;  %v4934_v5 = vld [vmem:[%s6098_s9 + $0x10] sm:$0xff]  }
 0x1df   : > { %v3113_v48 = vadd.f32 %v3112_v17, %v3048_v54  ;;  %v4590_v19 = vpop.f32.mrb[102].mxu0 }
 0x1e0   : > { %4948 = vtanh.f32 %v3121_v15  ;;  %v3124_v61 = vadd.f32 %v4590_v19, %v3059_v62  ;;  %v3115_v22 = vpop.f32.mrb[103].mxu0  ;;  %4630 = vmatpush3.bf16.msra.mxu0 %v4923_v36  ;;  %v4928_v62 = vld [vmem:[%s6096_s7 + $0x20] sm:$0xff]  }
 0x1e1   : > { %4950 = vtanh.f32 %v3113_v48  ;;  %v3116_v23 = vadd.f32 %v3115_v22, %v3051_v57  ;;  %4663 = vmatprep.subr.bf16.mxu0 %v4932_v63  ;;  %v4010_v15 = vld [vmem:[%s6095_s6] ss:$0 sm:$0xff] }
 0x1e2   : > { %v4941_v24 = vpop.eup %4940  ;;  %4952 = vtanh.f32 %v3124_v61 }
 0x1e3   : > { %v4943_v3 = vpop.eup %4942  ;;  %4954 = vtanh.f32 %v3116_v23 }
 0x1e4   : > { %v4945_v6 = vpop.eup %4944 }
 0x1e5   : > { %v4947_v18 = vpop.eup %4946  ;;  %v3136_v13 = vpack.c.bf16 %v4945_v6, %v4941_v24 }
 0x1e6   : > { %v3135_v16 = vpack.c.bf16 %v4947_v18, %v4943_v3 }
 0x1e8   : > { %4607 = vmatprep.mubr.bf16.mxu1 %v3135_v16 }
 0x1e9   : > { %4608 = vmatmul.mubr.bf16.vlgmr.msra.gmra.mrb[96].mxu1 %v3136_v13 }
 0x1ea   : > { %v4949_v26 = vpop.eup %4948  ;;  %4640 = vmatpush3.bf16.msra.mxu1 %v4924_v38 }
 0x1eb   : > { %v4951_v27 = vpop.eup %4950  ;;  %4641 = vmatprep.subr.bf16.mxu1 %v4925_v39 }
 0x1ec   : > { %v4953_v1 = vpop.eup %4952 }
 0x1ed   : > { %v4955_v14 = vpop.eup %4954  ;;  %v3138_v46 = vpack.c.bf16 %v4953_v1, %v4949_v26 }
 0x1ee   : > { %v3137_v30 = vpack.c.bf16 %v4955_v14, %v4951_v27  ;;  %4642 = vmatpush3.bf16.msra.mxu1 %v4925_v39 }
 0x1ef   : > { %4643 = vmatprep.subr.bf16.mxu1 %v4926_v40 }
 0x1f0   : > { %4611 = vmatprep.mubr.bf16.mxu1 %v3137_v30 }
 0x1f1   : > { %4612 = vmatmul.mubr.bf16.gmra.mrb[100].mxu1 %v3138_v46 }
 0x1f2   : > { %4644 = vmatpush3.bf16.msra.mxu1 %v4926_v40 }
 0x1f3   : > { %4645 = vmatprep.subr.bf16.mxu1 %v4927_v11 }
 0x1f6   : > { %4646 = vmatpush3.bf16.msra.mxu1 %v4927_v11 }
 0x1f7   : > { %4647 = vmatprep.subr.bf16.mxu1 %v4928_v62 }
 0x1fa   : > { %4648 = vmatpush3.bf16.msra.mxu1 %v4928_v62 }
 0x1fb   : > { %4649 = vmatprep.subr.bf16.mxu1 %v4929_v12 }
 0x1fe   : > { %4650 = vmatpush3.bf16.msra.mxu1 %v4929_v12 }
 0x1ff   : > { %4651 = vmatprep.subr.bf16.mxu1 %v4930_v56 }
 0x202   : > { %4652 = vmatpush3.bf16.msra.mxu1 %v4930_v56 }
 0x203   : > { %4653 = vmatprep.subr.bf16.mxu1 %v4931_v0 }
 0x206   : > { %4654 = vmatpush3.bf16.msra.mxu1 %v4931_v0 }
 0x207   : > { %4687 = vmatprep.subr.bf16.mxu1 %v4932_v63 }
 0x2bc   : > { %v4609_v41 = vpop.f32.mrb[96].mxu1 }
 0x2bd   : > { %v3253_v42 = vadd.f32 %v4609_v41, %v4001_v34  ;;  %v3244_v29 = vpop.f32.mrb[97].mxu1 }
 0x2be   : > { %v3245_v25 = vadd.f32 %v4001_v34, %v3244_v29  ;;  %v4610_v43 = vpop.f32.mrb[98].mxu1  ;;  %v4936_v29 = vld [vmem:[%s6098_s9 + $0x20] sm:$0xff]  }
 0x2bf   : > { %4956 = vtanh.f32 %v3253_v42  ;;  %v3256_v31 = vadd.f32 %v4610_v43, %v4001_v34  ;;  %v3247_v45 = vpop.f32.mrb[99].mxu1  ;;  %v4935_v42 = vld [vmem:[%s6098_s9 + $0x18] sm:$0xff]   ;;  %v4938_v43 = vld [vmem:[%s6098_s9 + $0x30] sm:$0xff]  }
 0x2c0   : > { %4958 = vtanh.f32 %v3245_v25  ;;  %v3248_v52 = vadd.f32 %v4001_v34, %v3247_v45  ;;  %v4937_v25 = vld [vmem:[%s6098_s9 + $0x28] sm:$0xff]   ;;  %v4019_v45 = vld [vmem:[%s6097_s8] ss:$0 sm:$0xff] }
 0x2c1   : > { %4960 = vtanh.f32 %v3256_v31  ;;  %v4939_v31 = vld [vmem:[%s6098_s9 + $0x38] sm:$0xff]  }
 0x2c2   : > { %4962 = vtanh.f32 %v3248_v52 }
 0x2c4   : > { %v4613_v53 = vpop.f32.mrb[100].mxu1 }
 0x2c5   : > { %v3269_v54 = vadd.f32 %v4613_v53, %v4001_v34  ;;  %v3260_v32 = vpop.f32.mrb[101].mxu1 }
 0x2c6   : > { %v3261_v55 = vadd.f32 %v4001_v34, %v3260_v32  ;;  %v4614_v57 = vpop.f32.mrb[102].mxu1 }
 0x2c7   : > { %4964 = vtanh.f32 %v3269_v54  ;;  %v3272_v37 = vadd.f32 %v4614_v57, %v4001_v34  ;;  %v3263_v58 = vpop.f32.mrb[103].mxu1 }
 0x2c8   : > { %4966 = vtanh.f32 %v3261_v55  ;;  %v3264_v50 = vadd.f32 %v4001_v34, %v3263_v58 }
 0x2c9   : > { %v4957_v59 = vpop.eup %4956  ;;  %4968 = vtanh.f32 %v3272_v37 }
 0x2ca   : > { %v4959_v60 = vpop.eup %4958  ;;  %4970 = vtanh.f32 %v3264_v50 }
 0x2cb   : > { %v4961_v51 = vpop.eup %4960 }
 0x2cc   : > { %v4963_v44 = vpop.eup %4962  ;;  %v3284_v2 = vpack.c.bf16 %v4961_v51, %v4957_v59 }
 0x2cd   : > { %v3283_v28 = vpack.c.bf16 %v4963_v44, %v4959_v60 }
 0x2cf   : > { %4631 = vmatprep.mubr.bf16.mxu0 %v3283_v28 }
 0x2d0   : > { %4632 = vmatmul.mubr.bf16.vlgmr.msra.gmra.mrb[104].mxu0 %v3284_v2 }
 0x2d1   : > { %v4965_v49 = vpop.eup %4964  ;;  %4664 = vmatpush3.bf16.msra.mxu0 %v4932_v63 }
 0x2d2   : > { %v4967_v7 = vpop.eup %4966  ;;  %4665 = vmatprep.subr.bf16.mxu0 %v4933_v47 }
 0x2d3   : > { %v4969_v8 = vpop.eup %4968 }
 0x2d4   : > { %v4971_v9 = vpop.eup %4970  ;;  %v3286_v4 = vpack.c.bf16 %v4969_v8, %v4965_v49 }
 0x2d5   : > { %v3285_v10 = vpack.c.bf16 %v4971_v9, %v4967_v7  ;;  %4666 = vmatpush3.bf16.msra.mxu0 %v4933_v47 }
 0x2d6   : > { %4667 = vmatprep.subr.bf16.mxu0 %v4934_v5 }
 0x2d7   : > { %4635 = vmatprep.mubr.bf16.mxu0 %v3285_v10 }
 0x2d8   : > { %4636 = vmatmul.mubr.bf16.gmra.mrb[108].mxu0 %v3286_v4 }
 0x2d9   : > { %4668 = vmatpush3.bf16.msra.mxu0 %v4934_v5 }
 0x2da   : > { %4669 = vmatprep.subr.bf16.mxu0 %v4935_v42 }
 0x2dd   : > { %4670 = vmatpush3.bf16.msra.mxu0 %v4935_v42 }
 0x2de   : > { %4671 = vmatprep.subr.bf16.mxu0 %v4936_v29 }
 0x2e1   : > { %4672 = vmatpush3.bf16.msra.mxu0 %v4936_v29 }
 0x2e2   : > { %4673 = vmatprep.subr.bf16.mxu0 %v4937_v25 }
 0x2e5   : > { %4674 = vmatpush3.bf16.msra.mxu0 %v4937_v25 }
 0x2e6   : > { %4675 = vmatprep.subr.bf16.mxu0 %v4938_v43 }
 0x2e9   : > { %4676 = vmatpush3.bf16.msra.mxu0 %v4938_v43 }
 0x2ea   : > { %4677 = vmatprep.subr.bf16.mxu0 %v4939_v31 }
 0x2ed   : > { %4678 = vmatpush3.bf16.msra.mxu0 %v4939_v31 }
 0x3a3   : > { %v4633_v17 = vpop.f32.mrb[104].mxu0 }
 0x3a4   : > { %v3401_v48 = vadd.f32 %v4633_v17, %v4010_v15  ;;  %v3392_v19 = vpop.f32.mrb[105].mxu0 }
 0x3a5   : > { %v3393_v61 = vadd.f32 %v4010_v15, %v3392_v19  ;;  %v4634_v22 = vpop.f32.mrb[106].mxu0 }
 0x3a6   : > { %4972 = vtanh.f32 %v3401_v48  ;;  %v3404_v23 = vadd.f32 %v4634_v22, %v4010_v15  ;;  %v3395_v24 = vpop.f32.mrb[107].mxu0 }
 0x3a7   : > { %4974 = vtanh.f32 %v3393_v61  ;;  %v3396_v3 = vadd.f32 %v4010_v15, %v3395_v24 }
 0x3a8   : > { %4976 = vtanh.f32 %v3404_v23 }
 0x3a9   : > { %4978 = vtanh.f32 %v3396_v3 }
 0x3ab   : > { %v4637_v6 = vpop.f32.mrb[108].mxu0 }
 0x3ac   : > { %v3417_v18 = vadd.f32 %v4637_v6, %v4010_v15  ;;  %v3408_v13 = vpop.f32.mrb[109].mxu0 }
 0x3ad   : > { %v3409_v16 = vadd.f32 %v4010_v15, %v3408_v13  ;;  %v4638_v26 = vpop.f32.mrb[110].mxu0 }
 0x3ae   : > { %4980 = vtanh.f32 %v3417_v18  ;;  %v3420_v27 = vadd.f32 %v4638_v26, %v4010_v15  ;;  %v3411_v1 = vpop.f32.mrb[111].mxu0 }
 0x3af   : > { %4982 = vtanh.f32 %v3409_v16  ;;  %v3412_v14 = vadd.f32 %v4010_v15, %v3411_v1 }
 0x3b0   : > { %v4973_v46 = vpop.eup %4972  ;;  %4984 = vtanh.f32 %v3420_v27 }
 0x3b1   : > { %v4975_v30 = vpop.eup %4974  ;;  %4986 = vtanh.f32 %v3412_v14 }
 0x3b2   : > { %v4977_v21 = vpop.eup %4976 }
 0x3b3   : > { %v4979_v33 = vpop.eup %4978  ;;  %v3432_v35 = vpack.c.bf16 %v4977_v21, %v4973_v46 }
 0x3b4   : > { %v3431_v20 = vpack.c.bf16 %v4979_v33, %v4975_v30 }
 0x3b6   : > { %4655 = vmatprep.mubr.bf16.mxu1 %v3431_v20 }
 0x3b7   : > { %4656 = vmatmul.mubr.bf16.vlgmr.msra.gmra.mrb[104].mxu1 %v3432_v35 }
 0x3b8   : > { %v4981_v36 = vpop.eup %4980  ;;  %4695 = vmatpush3.bf16.msra.mxu1 %v4932_v63 }
 0x3b9   : > { %v4983_v38 = vpop.eup %4982  ;;  %4688 = vmatprep.subr.bf16.mxu1 %v4933_v47 }
 0x3ba   : > { %v4985_v39 = vpop.eup %4984 }
 0x3bb   : > { %v4987_v40 = vpop.eup %4986  ;;  %v3434_v34 = vpack.c.bf16 %v4985_v39, %v4981_v36 }
 0x3bc   : > { %v3433_v41 = vpack.c.bf16 %v4987_v40, %v4983_v38  ;;  %4696 = vmatpush3.bf16.msra.mxu1 %v4933_v47 }
 0x3bd   : > { %4689 = vmatprep.subr.bf16.mxu1 %v4934_v5 }
 0x3be   : > { %4659 = vmatprep.mubr.bf16.mxu1 %v3433_v41 }
 0x3bf   : > { %4660 = vmatmul.mubr.bf16.gmra.mrb[108].mxu1 %v3434_v34 }
 0x3c0   : > { %4697 = vmatpush3.bf16.msra.mxu1 %v4934_v5  ;;  %v4028_v5 = vld [vmem:[%s6099_s10] ss:$0 sm:$0xff] }
 0x3c1   : > { %4690 = vmatprep.subr.bf16.mxu1 %v4935_v42 }
 0x3c4   : > { %4698 = vmatpush3.bf16.msra.mxu1 %v4935_v42 }
 0x3c5   : > { %4691 = vmatprep.subr.bf16.mxu1 %v4936_v29 }
 0x3c8   : > { %4699 = vmatpush3.bf16.msra.mxu1 %v4936_v29 }
 0x3c9   : > { %4692 = vmatprep.subr.bf16.mxu1 %v4937_v25 }
 0x3cc   : > { %4700 = vmatpush3.bf16.msra.mxu1 %v4937_v25 }
 0x3cd   : > { %4693 = vmatprep.subr.bf16.mxu1 %v4938_v43 }
 0x3d0   : > { %4701 = vmatpush3.bf16.msra.mxu1 %v4938_v43 }
 0x3d1   : > { %4694 = vmatprep.subr.bf16.mxu1 %v4939_v31 }
 0x3d4   : > { %4702 = vmatpush3.bf16.msra.mxu1 %v4939_v31 }
 0x48a   : > { %v4657_v52 = vpop.f32.mrb[104].mxu1 }
 0x48b   : > { %v3549_v53 = vadd.f32 %v4657_v52, %v4019_v45  ;;  %v3540_v54 = vpop.f32.mrb[105].mxu1 }
 0x48c   : > { %v3541_v32 = vadd.f32 %v4019_v45, %v3540_v54  ;;  %v4658_v55 = vpop.f32.mrb[106].mxu1 }
 0x48d   : > { %4988 = vtanh.f32 %v3549_v53  ;;  %v3552_v57 = vadd.f32 %v4658_v55, %v4019_v45  ;;  %v3543_v37 = vpop.f32.mrb[107].mxu1 }
 0x48e   : > { %4990 = vtanh.f32 %v3541_v32  ;;  %v3544_v58 = vadd.f32 %v4019_v45, %v3543_v37 }
 0x48f   : > { %4992 = vtanh.f32 %v3552_v57 }
 0x490   : > { %4994 = vtanh.f32 %v3544_v58 }
 0x492   : > { %v4661_v50 = vpop.f32.mrb[108].mxu1 }
 0x493   : > { %v3565_v59 = vadd.f32 %v4661_v50, %v4019_v45  ;;  %v3556_v60 = vpop.f32.mrb[109].mxu1 }
 0x494   : > { %v3557_v51 = vadd.f32 %v4019_v45, %v3556_v60  ;;  %v4662_v44 = vpop.f32.mrb[110].mxu1 }
 0x495   : > { %4996 = vtanh.f32 %v3565_v59  ;;  %v3568_v2 = vadd.f32 %v4662_v44, %v4019_v45  ;;  %v3559_v28 = vpop.f32.mrb[111].mxu1 }
 0x496   : > { %4998 = vtanh.f32 %v3557_v51  ;;  %v3560_v49 = vadd.f32 %v4019_v45, %v3559_v28 }
 0x497   : > { %v4989_v7 = vpop.eup %4988  ;;  %5000 = vtanh.f32 %v3568_v2 }
 0x498   : > { %v4991_v8 = vpop.eup %4990  ;;  %5002 = vtanh.f32 %v3560_v49 }
 0x499   : > { %v4993_v9 = vpop.eup %4992 }
 0x49a   : > { %v4995_v4 = vpop.eup %4994  ;;  %v3580_v10 = vpack.c.bf16 %v4993_v9, %v4989_v7 }
 0x49b   : > { %v3579_v11 = vpack.c.bf16 %v4995_v4, %v4991_v8 }
 0x49d   : > { %4679 = vmatprep.mubr.bf16.mxu0 %v3579_v11 }
 0x49e   : > { %4680 = vmatmul.mubr.bf16.vlgmr.msra.gmra.mrb[112].mxu0 %v3580_v10 }
 0x49f   : > { %v4997_v62 = vpop.eup %4996 }
 0x4a0   : > { %v4999_v12 = vpop.eup %4998 }
 0x4a1   : > { %v5001_v56 = vpop.eup %5000 }
 0x4a2   : > { %v5003_v0 = vpop.eup %5002  ;;  %v3582_v63 = vpack.c.bf16 %v5001_v56, %v4997_v62 }
 0x4a3   : > { %v3581_v47 = vpack.c.bf16 %v5003_v0, %v4999_v12 }
 0x4a5   : > { %4683 = vmatprep.mubr.bf16.mxu1 %v3581_v47 }
 0x4a6   : > { %4684 = vmatmul.mubr.bf16.vlgmr.msra.gmra.mrb[112].mxu1 %v3582_v63 }
 0x571   : > { %v4681_v15 = vpop.f32.mrb[112].mxu0 }
 0x572   : > { %v3697_v17 = vadd.f32 %v4681_v15, %v4028_v5  ;;  %v3688_v48 = vpop.f32.mrb[113].mxu0 }
 0x573   : > { %v3689_v19 = vadd.f32 %v4028_v5, %v3688_v48  ;;  %v4682_v61 = vpop.f32.mrb[114].mxu0 }
 0x574   : > { %5004 = vtanh.f32 %v3697_v17  ;;  %v3700_v22 = vadd.f32 %v4682_v61, %v4028_v5  ;;  %v3691_v23 = vpop.f32.mrb[115].mxu0 }
 0x575   : > { %5006 = vtanh.f32 %v3689_v19  ;;  %v3692_v24 = vadd.f32 %v4028_v5, %v3691_v23 }
 0x576   : > { %5008 = vtanh.f32 %v3700_v22 }
 0x577   : > { %5010 = vtanh.f32 %v3692_v24 }
 0x579   : > { %v4685_v3 = vpop.f32.mrb[112].mxu1 }
 0x57a   : > { %v3713_v6 = vadd.f32 %v4685_v3, %v4028_v5  ;;  %v3704_v18 = vpop.f32.mrb[113].mxu1 }
 0x57b   : > { %v3705_v13 = vadd.f32 %v4028_v5, %v3704_v18  ;;  %v4686_v16 = vpop.f32.mrb[114].mxu1 }
 0x57c   : > { %5012 = vtanh.f32 %v3713_v6  ;;  %v3716_v26 = vadd.f32 %v4686_v16, %v4028_v5  ;;  %v3707_v27 = vpop.f32.mrb[115].mxu1 }
 0x57d   : > { %5014 = vtanh.f32 %v3705_v13  ;;  %v3708_v1 = vadd.f32 %v4028_v5, %v3707_v27 }
 0x57e   : > { %v5005_v14 = vpop.eup %5004  ;;  %5016 = vtanh.f32 %v3716_v26 }
 0x57f   : > { %v5007_v46 = vpop.eup %5006  ;;  %3729 = vst [vmem:[%s391_s20 + $0x10] sm:$0xff] %v5005_v14  ;;  %5018 = vtanh.f32 %v3708_v1 }
 0x580   : > { %v5009_v30 = vpop.eup %5008  ;;  %3727 = vst [vmem:[%s391_s20] sm:$0xff] %v5007_v46 }
 0x581   : > { %v5011_v21 = vpop.eup %5010  ;;  %3730 = vst [vmem:[%s391_s20 + $0x18] sm:$0xff] %v5009_v30 }
 0x582   : > { %3728 = vst [vmem:[%s391_s20 + $0x8] sm:$0xff] %v5011_v21 }
 0x586   : > { %v5013_v33 = vpop.eup %5012 }
 0x587   : > { %v5015_v35 = vpop.eup %5014  ;;  %3733 = vst [vmem:[%s391_s20 + $0x30] sm:$0xff] %v5013_v33 }
 0x588   : > { %v5017_v20 = vpop.eup %5016  ;;  %3731 = vst [vmem:[%s391_s20 + $0x20] sm:$0xff] %v5015_v35 }
 0x589   : > { %v5019_v36 = vpop.eup %5018  ;;  %3734 = vst [vmem:[%s391_s20 + $0x38] sm:$0xff] %v5017_v20 }
 0x58a   : > { %3732 = vst [vmem:[%s391_s20 + $0x28] sm:$0xff] %v5019_v36 }
 0x58b PF: > { %s21_s17 = sadd.s32 1, %s5026_s17  }
 0x58c   : > { %p18_p4 = scmp.ge.s32.totalorder %s21_s17, 4  }
 0x58e   :  { %20 = sbr.rel (!%p18_p4) target bundleno = 1 (0x1), region = 94 }

</bundles_post_ra>
